<compile_context>
chip_gen: v7x
topology: tpu7x:2x2x1
jax: 0.10.0
libtpu: 0.0.40
codegen_flags: <defaults>
</compile_context>

<pallas_src>
import functools

import jax
import jax.numpy as jnp
from jax.experimental import pallas as pl
from jax.experimental.pallas import tpu as pltpu

NUM_INPUTS = 2
NUM_LAYERS = 5
LAYER_WIDTH = 10
NUM_OUTPUTS = 3


def _round_up(x, m):
    return (x + m - 1) // m * m


def _mlp_kernel(num_layers, num_outputs, x_ref, w_ref, b_ref, out_ref):
    """Transposed-layout MLP (batch on lanes).

    x_ref:   (layer_width, TILE_B)   inputs, rows >= num_inputs are zero-padded
    w_ref:   (num_layers+1, W, W)    packed weights, PyTorch (out, in) layout;
                                     layer 0 columns >= num_inputs are zero,
                                     last layer rows >= num_outputs are zero.
    b_ref:   (num_layers+1, W, 1)    packed bias columns.
    out_ref: (num_outputs, TILE_B)
    """
    prec = jax.lax.Precision.HIGHEST  # exact f32 matmuls; MXU slot has slack

    # Input + hidden layers (all shape-identical): (W, W) @ (W, B), then sin.
    h = x_ref[...]
    for l in range(num_layers):
        h = jnp.dot(w_ref[l], h, preferred_element_type=jnp.float32,
                    precision=prec)
        h = jnp.sin(h + b_ref[l])

    # Output layer + sigmoid: (num_outputs, W) @ (W, B)
    w_out = w_ref[num_layers][:num_outputs, :]
    b_out = b_ref[num_layers][:num_outputs, :]
    y = jnp.dot(w_out, h, preferred_element_type=jnp.float32, precision=prec)
    out_ref[...] = jax.nn.sigmoid(y + b_out)


@functools.partial(jax.jit, static_argnames=("num_outputs", "block_batch"))
def mlp_forward(x, w_all, b_all, *, num_outputs=NUM_OUTPUTS, block_batch=8192):
    """x: (batch, num_inputs) f32.  Returns (batch, num_outputs) f32."""
    batch, num_inputs = x.shape
    num_layers = w_all.shape[0] - 1
    layer_width = w_all.shape[1]
    x = x.astype(jnp.float32)

    # Lane-dense batch tiles (multiple of 128).  Clamp the tile to ~half the
    # padded batch so the grid has >=2 steps whenever possible (v7x megacore).
    padded_min = _round_up(batch, 128)
    tile_b = min(block_batch, _round_up(pl.cdiv(padded_min, 2), 128))
    tile_b = max(_round_up(tile_b, 128), 128)
    padded = _round_up(batch, tile_b)

    # Pad batch to a whole grid and features up to layer_width (zero rows) so
    # layer 0 needs no in-kernel lane slice.  Under this jit the pad/transpose
    # fuse with the kernel's input relayout instead of extra HBM passes.
    x = jnp.pad(x, ((0, padded - batch), (0, layer_width - num_inputs)))
    x_t = x.T  # (layer_width, padded): batch on the lane axis

    kernel = functools.partial(_mlp_kernel, num_layers, num_outputs)
    out_t = pl.pallas_call(
        kernel,
        out_shape=jax.ShapeDtypeStruct((num_outputs, padded), jnp.float32),
        grid=(padded // tile_b,),
        in_specs=[
            pl.BlockSpec((layer_width, tile_b), lambda i: (0, i)),
            pl.BlockSpec(w_all.shape, lambda i: (0, 0, 0)),  # resident weights
            pl.BlockSpec(b_all.shape, lambda i: (0, 0, 0)),  # resident biases
        ],
        out_specs=pl.BlockSpec((num_outputs, tile_b), lambda i: (0, i)),
        compiler_params=pltpu.CompilerParams(
            dimension_semantics=("parallel",),
            vmem_limit_bytes=32 * 1024 * 1024),
    )(x_t, w_all, b_all)

    return out_t.T[:batch]


def init_params(key, num_inputs=NUM_INPUTS, num_layers=NUM_LAYERS,
                layer_width=LAYER_WIDTH, num_outputs=NUM_OUTPUTS):
    """nn.Linear-style init: W (out, in), b (out,), U(-1/sqrt(in), 1/sqrt(in))."""
    dims = [(num_inputs, layer_width)]
    dims += [(layer_width, layer_width)] * (num_layers - 1)
    dims += [(layer_width, num_outputs)]

    params = []
    for fan_in, fan_out in dims:
        key, kw, kb = jax.random.split(key, 3)
        bound = 1.0 / (fan_in ** 0.5)
        w = jax.random.uniform(kw, (fan_out, fan_in), jnp.float32, -bound, bound)
        b = jax.random.uniform(kb, (fan_out,), jnp.float32, -bound, bound)
        params += [w, b]
    return params


def pack_params(params, num_inputs=NUM_INPUTS, num_layers=NUM_LAYERS,
                layer_width=LAYER_WIDTH, num_outputs=NUM_OUTPUTS):
    """Pack the flat [W, b, W, b, ...] list into two zero-padded slabs."""
    assert num_inputs <= layer_width, "packing assumes num_inputs <= layer_width"
    assert num_outputs <= layer_width, "packing assumes num_outputs <= layer_width"

    w_all = jnp.zeros((num_layers + 1, layer_width, layer_width), jnp.float32)
    b_all = jnp.zeros((num_layers + 1, layer_width, 1), jnp.float32)

    w_all = w_all.at[0, :, :num_inputs].set(params[0])
    b_all = b_all.at[0, :, 0].set(params[1])
    for l in range(1, num_layers):
        w_all = w_all.at[l].set(params[2 * l])
        b_all = b_all.at[l, :, 0].set(params[2 * l + 1])
    w_all = w_all.at[num_layers, :num_outputs, :].set(params[2 * num_layers])
    b_all = b_all.at[num_layers, :num_outputs, 0].set(params[2 * num_layers + 1])
    return w_all, b_all


def reference_forward(x, params, num_layers=NUM_LAYERS):
    prec = jax.lax.Precision.HIGHEST
    h = x
    for i in range(num_layers):
        w, b = params[2 * i], params[2 * i + 1]
        h = jnp.sin(jnp.dot(h, w.T, precision=prec) + b)
    w, b = params[2 * num_layers], params[2 * num_layers + 1]
    return jax.nn.sigmoid(jnp.dot(h, w.T, precision=prec) + b)


if __name__ == "__main__":
    key = jax.random.PRNGKey(0)
    key, kx1, kx2, kx3 = jax.random.split(key, 4)

    params = init_params(key)
    w_all, b_all = pack_params(params)

    # Small shape matching the module (batch=8, num_inputs=2).
    batch = 8
    x = jax.random.normal(kx1, (batch, NUM_INPUTS), jnp.float32)
    out = jax.block_until_ready(mlp_forward(x, w_all, b_all))
    ref = reference_forward(x, params)
    assert out.shape == (batch, NUM_OUTPUTS)
    assert jnp.allclose(out, ref, atol=1e-5, rtol=1e-5)

    # Multi-tile grid with padding/slicing (block_batch=128 -> 3 grid steps).
    batch2 = 300
    x2 = jax.random.normal(kx2, (batch2, NUM_INPUTS), jnp.float32)
    out2 = jax.block_until_ready(mlp_forward(x2, w_all, b_all, block_batch=128))
    ref2 = reference_forward(x2, params)
    assert out2.shape == (batch2, NUM_OUTPUTS)
    assert jnp.allclose(out2, ref2, atol=1e-5, rtol=1e-5)

    # Default tiling path: tile is clamped to half the padded batch -> 2 steps.
    batch3 = 1024
    x3 = jax.random.normal(kx3, (batch3, NUM_INPUTS), jnp.float32)
    out3 = jax.block_until_ready(mlp_forward(x3, w_all, b_all))
    ref3 = reference_forward(x3, params)
    assert out3.shape == (batch3, NUM_OUTPUTS)
    assert jnp.allclose(out3, ref3, atol=1e-5, rtol=1e-5)

    print("KERNEL_OK")
</pallas_src>

<mosaic_0001>
module attributes {stable_mosaic.version = 11 : i64} {
  func.func @_mlp_kernel(%arg0: i32, %arg1: memref<10x128xf32, #tpu.memory_space<vmem>>, %arg2: memref<6x10x10xf32, #tpu.memory_space<vmem>>, %arg3: memref<6x10x1xf32, #tpu.memory_space<vmem>>, %arg4: memref<3x128xf32, #tpu.memory_space<vmem>>) attributes {dimension_semantics = [#tpu.dimension_semantics<parallel>], iteration_bounds = array<i64: 1>, scalar_prefetch = 0 : i64, scratch_operands = 0 : i64, tpu.core_type = #tpu.core_type<tc>, window_params = [{transform_indices = @transform_0, window_bounds = array<i64: 10, 128>}, {pipeline_mode = #tpu.pipeline_mode<synchronous>, transform_indices = @transform_1, window_bounds = array<i64: 6, 10, 10>}, {pipeline_mode = #tpu.pipeline_mode<synchronous>, transform_indices = @transform_2, window_bounds = array<i64: 6, 10, 1>}, {transform_indices = @transform_3, window_bounds = array<i64: 3, 128>}]} {
    %c0 = arith.constant 0 : index
    %c0_0 = arith.constant 0 : index
    %0 = vector.load %arg1[%c0, %c0_0] : memref<10x128xf32, #tpu.memory_space<vmem>>, vector<10x128xf32>
    %c0_1 = arith.constant 0 : index
    %c0_2 = arith.constant 0 : index
    %c0_3 = arith.constant 0 : index
    %1 = vector.load %arg2[%c0_1, %c0_2, %c0_3] : memref<6x10x10xf32, #tpu.memory_space<vmem>>, vector<1x10x10xf32>
    %2 = vector.shape_cast %1 : vector<1x10x10xf32> to vector<10x10xf32>
    %cst = arith.constant dense<0.000000e+00> : vector<10x128xf32>
    %3 = tpu.matmul %2, %0, %cst {dimension_numbers = #tpu.dot_dimension_numbers<[1], [0], [0], [1], [0, 0, 1, 1], [], []>, precision = #tpu.contract_precision<fp32>} : vector<10x10xf32>, vector<10x128xf32>, vector<10x128xf32> -> vector<10x128xf32>
    %c0_4 = arith.constant 0 : index
    %c0_5 = arith.constant 0 : index
    %c0_6 = arith.constant 0 : index
    %4 = vector.load %arg3[%c0_4, %c0_5, %c0_6] : memref<6x10x1xf32, #tpu.memory_space<vmem>>, vector<1x10x1xf32>
    %5 = vector.shape_cast %4 : vector<1x10x1xf32> to vector<10x1xf32>
    %6 = vector.broadcast %5 : vector<10x1xf32> to vector<10x128xf32>
    %7 = arith.addf %3, %6 : vector<10x128xf32>
    %8 = math.sin %7 : vector<10x128xf32>
    %c1 = arith.constant 1 : index
    %c0_7 = arith.constant 0 : index
    %c0_8 = arith.constant 0 : index
    %9 = vector.load %arg2[%c1, %c0_7, %c0_8] : memref<6x10x10xf32, #tpu.memory_space<vmem>>, vector<1x10x10xf32>
    %10 = vector.shape_cast %9 : vector<1x10x10xf32> to vector<10x10xf32>
    %cst_9 = arith.constant dense<0.000000e+00> : vector<10x128xf32>
    %11 = tpu.matmul %10, %8, %cst_9 {dimension_numbers = #tpu.dot_dimension_numbers<[1], [0], [0], [1], [0, 0, 1, 1], [], []>, precision = #tpu.contract_precision<fp32>} : vector<10x10xf32>, vector<10x128xf32>, vector<10x128xf32> -> vector<10x128xf32>
    %c1_10 = arith.constant 1 : index
    %c0_11 = arith.constant 0 : index
    %c0_12 = arith.constant 0 : index
    %12 = vector.load %arg3[%c1_10, %c0_11, %c0_12] : memref<6x10x1xf32, #tpu.memory_space<vmem>>, vector<1x10x1xf32>
    %13 = vector.shape_cast %12 : vector<1x10x1xf32> to vector<10x1xf32>
    %14 = vector.broadcast %13 : vector<10x1xf32> to vector<10x128xf32>
    %15 = arith.addf %11, %14 : vector<10x128xf32>
    %16 = math.sin %15 : vector<10x128xf32>
    %c2 = arith.constant 2 : index
    %c0_13 = arith.constant 0 : index
    %c0_14 = arith.constant 0 : index
    %17 = vector.load %arg2[%c2, %c0_13, %c0_14] : memref<6x10x10xf32, #tpu.memory_space<vmem>>, vector<1x10x10xf32>
    %18 = vector.shape_cast %17 : vector<1x10x10xf32> to vector<10x10xf32>
    %cst_15 = arith.constant dense<0.000000e+00> : vector<10x128xf32>
    %19 = tpu.matmul %18, %16, %cst_15 {dimension_numbers = #tpu.dot_dimension_numbers<[1], [0], [0], [1], [0, 0, 1, 1], [], []>, precision = #tpu.contract_precision<fp32>} : vector<10x10xf32>, vector<10x128xf32>, vector<10x128xf32> -> vector<10x128xf32>
    %c2_16 = arith.constant 2 : index
    %c0_17 = arith.constant 0 : index
    %c0_18 = arith.constant 0 : index
    %20 = vector.load %arg3[%c2_16, %c0_17, %c0_18] : memref<6x10x1xf32, #tpu.memory_space<vmem>>, vector<1x10x1xf32>
    %21 = vector.shape_cast %20 : vector<1x10x1xf32> to vector<10x1xf32>
    %22 = vector.broadcast %21 : vector<10x1xf32> to vector<10x128xf32>
    %23 = arith.addf %19, %22 : vector<10x128xf32>
    %24 = math.sin %23 : vector<10x128xf32>
    %c3 = arith.constant 3 : index
    %c0_19 = arith.constant 0 : index
    %c0_20 = arith.constant 0 : index
    %25 = vector.load %arg2[%c3, %c0_19, %c0_20] : memref<6x10x10xf32, #tpu.memory_space<vmem>>, vector<1x10x10xf32>
    %26 = vector.shape_cast %25 : vector<1x10x10xf32> to vector<10x10xf32>
    %cst_21 = arith.constant dense<0.000000e+00> : vector<10x128xf32>
    %27 = tpu.matmul %26, %24, %cst_21 {dimension_numbers = #tpu.dot_dimension_numbers<[1], [0], [0], [1], [0, 0, 1, 1], [], []>, precision = #tpu.contract_precision<fp32>} : vector<10x10xf32>, vector<10x128xf32>, vector<10x128xf32> -> vector<10x128xf32>
    %c3_22 = arith.constant 3 : index
    %c0_23 = arith.constant 0 : index
    %c0_24 = arith.constant 0 : index
    %28 = vector.load %arg3[%c3_22, %c0_23, %c0_24] : memref<6x10x1xf32, #tpu.memory_space<vmem>>, vector<1x10x1xf32>
    %29 = vector.shape_cast %28 : vector<1x10x1xf32> to vector<10x1xf32>
    %30 = vector.broadcast %29 : vector<10x1xf32> to vector<10x128xf32>
    %31 = arith.addf %27, %30 : vector<10x128xf32>
    %32 = math.sin %31 : vector<10x128xf32>
    %c4 = arith.constant 4 : index
    %c0_25 = arith.constant 0 : index
    %c0_26 = arith.constant 0 : index
    %33 = vector.load %arg2[%c4, %c0_25, %c0_26] : memref<6x10x10xf32, #tpu.memory_space<vmem>>, vector<1x10x10xf32>
    %34 = vector.shape_cast %33 : vector<1x10x10xf32> to vector<10x10xf32>
    %cst_27 = arith.constant dense<0.000000e+00> : vector<10x128xf32>
    %35 = tpu.matmul %34, %32, %cst_27 {dimension_numbers = #tpu.dot_dimension_numbers<[1], [0], [0], [1], [0, 0, 1, 1], [], []>, precision = #tpu.contract_precision<fp32>} : vector<10x10xf32>, vector<10x128xf32>, vector<10x128xf32> -> vector<10x128xf32>
    %c4_28 = arith.constant 4 : index
    %c0_29 = arith.constant 0 : index
    %c0_30 = arith.constant 0 : index
    %36 = vector.load %arg3[%c4_28, %c0_29, %c0_30] : memref<6x10x1xf32, #tpu.memory_space<vmem>>, vector<1x10x1xf32>
    %37 = vector.shape_cast %36 : vector<1x10x1xf32> to vector<10x1xf32>
    %38 = vector.broadcast %37 : vector<10x1xf32> to vector<10x128xf32>
    %39 = arith.addf %35, %38 : vector<10x128xf32>
    %40 = math.sin %39 : vector<10x128xf32>
    %c5 = arith.constant 5 : index
    %c0_31 = arith.constant 0 : index
    %c0_32 = arith.constant 0 : index
    %41 = vector.load %arg2[%c5, %c0_31, %c0_32] : memref<6x10x10xf32, #tpu.memory_space<vmem>>, vector<1x10x10xf32>
    %42 = vector.shape_cast %41 : vector<1x10x10xf32> to vector<10x10xf32>
    %43 = vector.extract_strided_slice %42 {offsets = [0, 0], sizes = [3, 10], strides = [1, 1]} : vector<10x10xf32> to vector<3x10xf32>
    %c5_33 = arith.constant 5 : index
    %c0_34 = arith.constant 0 : index
    %c0_35 = arith.constant 0 : index
    %44 = vector.load %arg3[%c5_33, %c0_34, %c0_35] : memref<6x10x1xf32, #tpu.memory_space<vmem>>, vector<1x10x1xf32>
    %45 = vector.shape_cast %44 : vector<1x10x1xf32> to vector<10x1xf32>
    %46 = vector.extract_strided_slice %45 {offsets = [0, 0], sizes = [3, 1], strides = [1, 1]} : vector<10x1xf32> to vector<3x1xf32>
    %cst_36 = arith.constant dense<0.000000e+00> : vector<3x128xf32>
    %47 = tpu.matmul %43, %40, %cst_36 {dimension_numbers = #tpu.dot_dimension_numbers<[1], [0], [0], [1], [0, 0, 1, 1], [], []>, precision = #tpu.contract_precision<fp32>} : vector<3x10xf32>, vector<10x128xf32>, vector<3x128xf32> -> vector<3x128xf32>
    %48 = vector.broadcast %46 : vector<3x1xf32> to vector<3x128xf32>
    %49 = arith.addf %47, %48 : vector<3x128xf32>
    %50 = arith.negf %49 : vector<3x128xf32>
    %51 = math.exp %50 : vector<3x128xf32>
    %cst_37 = arith.constant 1.000000e+00 : f32
    %52 = vector.broadcast %cst_37 : f32 to vector<3x128xf32>
    %53 = arith.addf %52, %51 : vector<3x128xf32>
    %54 = arith.divf %52, %53 : vector<3x128xf32>
    %c0_38 = arith.constant 0 : index
    %c0_39 = arith.constant 0 : index
    %55 = vector.load %arg4[%c0_38, %c0_39] : memref<3x128xf32, #tpu.memory_space<vmem>>, vector<3x128xf32>
    tpu.vector_store %arg4[%c0_38, %c0_39], %54 {strides = array<i32>} : memref<3x128xf32, #tpu.memory_space<vmem>>, vector<3x128xf32>,
    return
  }
  func.func @transform_0(%arg0: i32) -> (i32, i32) {
    %c0_i32 = arith.constant 0 : i32
    %c0_i32_0 = arith.constant 0 : i32
    return %c0_i32, %arg0 : i32, i32
  }
  func.func @transform_1(%arg0: i32) -> (i32, i32, i32) {
    %c0_i32 = arith.constant 0 : i32
    %c0_i32_0 = arith.constant 0 : i32
    %c0_i32_1 = arith.constant 0 : i32
    %c0_i32_2 = arith.constant 0 : i32
    return %c0_i32, %c0_i32_0, %c0_i32_1 : i32, i32, i32
  }
  func.func @transform_2(%arg0: i32) -> (i32, i32, i32) {
    %c0_i32 = arith.constant 0 : i32
    %c0_i32_0 = arith.constant 0 : i32
    %c0_i32_1 = arith.constant 0 : i32
    %c0_i32_2 = arith.constant 0 : i32
    return %c0_i32, %c0_i32_0, %c0_i32_1 : i32, i32, i32
  }
  func.func @transform_3(%arg0: i32) -> (i32, i32) {
    %c0_i32 = arith.constant 0 : i32
    %c0_i32_0 = arith.constant 0 : i32
    return %c0_i32, %arg0 : i32, i32
  }
}

</mosaic_0001>

<bundles_post_ra>
// kernel: mlp_forward.1
= control target key start
LH: loop header
LB: loop body
LE: loop exit
PB: predicated region body
PF: predicated region fallthrough
CT: control target
= control target key end

     0   :  { %vm38_vm0 = vcmask 1041408   ;;  %vm31_vm1 = vcmask 80896   ;;  %v4966_v10 = vmov 0   ;;  %s5629_s0 = inlined_call_operand.vmem [shape: f32[10,128], index: 0, kind: input, shape index: {}]   ;;  %s5630_s1 = inlined_call_operand.vmem [shape: f32[6,10,10], index: 1, kind: input, shape index: {}]   ;;  %s5631_s2 = inlined_call_operand.vmem [shape: f32[6,10,1], index: 2, kind: input, shape index: {}]   ;;  %s5632_s3 = inlined_call_operand.hbm [shape: f32[3,128], index: 3, kind: output, shape index: {}]  }
   0x1   :  { %v15_v0 = vld [vmem:[%s5629_s0] sm:$0xff]  ;;  %v16_v1 = vld [vmem:[%s5629_s0 + $0x8] sm:$0x3]  ;;  %4896 = vset.pattern.permute.xlu0 %v4966_v10  ;;  %4897 = vset.pattern.permute.xlu1 %v4966_v10 }
   0x2   :  { %v17_v2 = vld [vmem:[%s5630_s1] sm:$0xff]  ;;  %v40_v3 = vsel %vm38_vm0, %v16_v1, 0  ;;  %v43_v4 = vand.u32 4294901760, %v15_v0  ;;  %v18_v6 = vld [vmem:[%s5630_s1 + $0x8] sm:$0x3] }
   0x3   :  { %v33_v5 = vsel %vm31_vm1, %v17_v2, 0  ;;  %v46_v7 = vand.u32 4294901760, %v40_v3  ;;  %v36_v9 = vsel %vm31_vm1, %v18_v6, 0  ;;  %v20_v11 = vld [vmem:[%s5631_s2 + $0x8] sm:$0x3]  ;;  %v19_v17 = vld [vmem:[%s5631_s2] sm:$0xff] }
   0x4   :  { %v109_v8 = vand.u32 4294901760, %v33_v5  ;;  %v119_v12 = vand.u32 4294901760, %v36_v9  ;;  %v131_v13 = vsub.f32 %v15_v0, %v43_v4  ;;  %28 = vperm.xlu0 %4896, %v20_v11  }
   0x5   :  { %v4636_v14 = vpack.c.bf16 %v46_v7, %v43_v4  ;;  %v138_v16 = vsub.f32 %v40_v3, %v46_v7 }
   0x6   :  { %v110_v15 = vsub.f32 %v33_v5, %v109_v8 }
   0x7   :  { %8 = vsyncpa [#allocation3], 0  ;;  %v120_v18 = vsub.f32 %v36_v9, %v119_v12  ;;  %v132_v19 = vand.u32 4294901760, %v131_v13  ;;  %4637 = vmatprep.subr.bf16.mxu0 %v4636_v14  ;;  %v139_v21 = vand.u32 4294901760, %v138_v16  ;;  %v4210_v26 = vld [vmem:[%s5631_s2 + $0x28] sm:$0x3]  ;;  %v4644_v33 = vpack.c.bf16 %v138_v16, %v131_v13 }
   0x8   :  { %v111_v20 = vand.u32 4294901760, %v110_v15  ;;  %4639 = vmatpush3.bf16.msra.mxu0 %v4636_v14  ;;  %23 = vperm.xlu0 %4896, %v19_v17   ;;  %v4222_v34 = vld [vmem:[%s5631_s2 + $0x38] sm:$0x3]  ;;  %v4234_v35 = vld [vmem:[%s5631_s2 + $0x48] sm:$0x3]  ;;  %v4244_v36 = vld [vmem:[%s5631_s2 + $0x50] sm:$0xff] }
   0x9   :  { %v121_v22 = vand.u32 4294901760, %v120_v18  ;;  %v133_v23 = vsub.f32 %v131_v13, %v132_v19  ;;  %v140_v25 = vsub.f32 %v138_v16, %v139_v21  ;;  %v4652_v37 = vpack.c.bf16 %v139_v21, %v132_v19  ;;  %v4195_v38 = vld [vmem:[%s5630_s1 + $0x10] sm:$0xff]  ;;  %v4198_v6 = vld [vmem:[%s5631_s2 + $0x18] sm:$0x3] }
   0xa   :  { %v112_v24 = vsub.f32 %v110_v15, %v111_v20  ;;  %v769_v39 = vsel %vm31_vm1, %v4195_v38, 0  ;;  %765 = vperm.xlu1 %4897, %v4198_v6   ;;  %v4970_v16 = vmov 2102212464  }
   0xb   :  { %v122_v27 = vsub.f32 %v120_v18, %v121_v22  ;;  %v134_v28 = vand.u32 4294901760, %v133_v23  ;;  %v141_v30 = vand.u32 4294901760, %v140_v25  ;;  %v5034_v40 = vand.u32 4294901760, %v769_v39 }
   0xc   :  { %v113_v29 = vand.u32 4294901760, %v112_v24  ;;  %1500 = vperm.xlu0 %4896, %v4210_v26   ;;  %v4972_v26 = vmov 1326507024  }
   0xd   :  { %v123_v31 = vand.u32 4294901760, %v122_v27  ;;  %v4640_v32 = vpack.c.bf16 %v141_v30, %v134_v28  ;;  %v5037_v41 = vsub.f32 %v769_v39, %v5034_v40 }
   0xe   :  { %4388 = vmatprep.mubr.f32.mxu0 %v113_v29 }
   0xf   :  { %4389 = vmatmul.mubr.f32.vlgmr.msra.gmra.mrb[0].mxu0 %v123_v31  ;;  %4641 = vmatprep.subr.bf16.mxu0 %v4640_v32  ;;  %v846_v42 = vand.u32 4294901760, %v5037_v41 }
  0x10   :  { %4395 = vmatprep.mubr.f32.mxu0 %v109_v8  ;;  %4643 = vmatpush3.bf16.msra.mxu0 %v4640_v32 }
  0x11   :  { %2235 = vperm.xlu0 %4896, %v4222_v34   ;;  %4645 = vmatprep.subr.bf16.mxu0 %v4644_v33  ;;  %v847_v43 = vsub.f32 %v5037_v41, %v846_v42  ;;  %v4209_v34 = vld [vmem:[%s5631_s2 + $0x20] sm:$0xff] }
  0x13   :  { %v848_v44 = vand.u32 4294901760, %v847_v43 }
  0x15   :  { %2970 = vperm.xlu0 %4896, %v4234_v35   ;;  %4430 = vmatprep.mubr.f32.mxu1 %v848_v44 }
  0x17   :  { %4396 = vmatmul.mubr.f32.vlgmr.msra.gmra.mrb[0].mxu0 %v119_v12 }
  0x18   :  { %4647 = vmatpush3.bf16.msra.mxu0 %v4644_v33  ;;  %4402 = vmatprep.mubr.f32.mxu0 %v110_v15 }
  0x19   :  { %4649 = vmatprep.subr.bf16.mxu0 %v4636_v14  ;;  %3698 = vperm.xlu0 %4896, %v4244_v36  }
  0x1f   :  { %4403 = vmatmul.mubr.f32.vlgmr.msra.gmra.mrb[0].mxu0 %v120_v18  ;;  %v4971_v18 = vmov 920167782  }
  0x20   :  { %4651 = vmatpush3.bf16.msra.mxu0 %v4636_v14  ;;  %4409 = vmatprep.mubr.f32.mxu0 %v111_v20  ;;  %v4197_v20 = vld [vmem:[%s5631_s2 + $0x10] sm:$0xff] }
  0x21   :  { %4653 = vmatprep.subr.bf16.mxu0 %v4652_v37  ;;  %760 = vperm.xlu1 %4897, %v4197_v20  }
  0x25   :  { %1495 = vperm.xlu1 %4897, %v4209_v34  }
  0x27   :  { %4410 = vmatmul.mubr.f32.vlgmr.msra.gmra.mrb[0].mxu0 %v121_v22 }
  0x28   :  { %4655 = vmatpush3.bf16.msra.mxu0 %v4652_v37  ;;  %4416 = vmatprep.mubr.f32.mxu0 %v109_v8 }
  0x29   :  { %4657 = vmatprep.subr.bf16.mxu0 %v4636_v14 }
  0x2f   :  { %4417 = vmatmul.mubr.f32.vlgmr.msra.gmra.mrb[0].mxu0 %v119_v12 }
  0x30   :  { %4659 = vmatpush3.bf16.msra.mxu0 %v4636_v14  ;;  %4423 = vmatprep.mubr.f32.mxu0 %v109_v8  ;;  %v4967_v8 = vmov 683565275   ;;  %v4969_v14 = vmov 2131351028  }
  0x37   :  { %4424 = vmatmul.mubr.f32.vlgmr.msra.gmra.mrb[0].mxu0 %v119_v12  ;;  %v4968_v12 = vmov 2475754826  }
  0x83   :  { %v29_v45 = vpop.permute.xlu0 %28 }
  0x87   :  { %v24_v47 = vpop.permute.xlu0 %23 }
 0x10a   :  { %v4425_v46 = vpop.f32.mrb[0].mxu0 }
 0x10b   :  { %v5043_v48 = vadd.f32 %v4425_v46, %v29_v45  ;;  %v534_v49 = vpop.f32.mrb[1].mxu0 }
 0x10c   :  { %v5045_v50 = vadd.f32 %v534_v49, %v24_v47 }
 0x10d   :  { %v648_v51 = vand.u32 2147483647, %v5043_v48  ;;  %v651_v52 = vand.u32 2139095040, %v5043_v48 }
 0x10e   :  { %v547_v53 = vand.u32 2139095040, %v5045_v50  ;;  %v544_v56 = vand.u32 2147483647, %v5045_v50 }
 0x10f   :  { %v652_v54 = vshrl.u32 %v651_v52, 23  ;;  %v655_v55 = vand.u32 8388607, %v648_v51 }
 0x110   :  { %v548_v57 = vshrl.u32 %v547_v53, 23  ;;  %v5055_v62 = vand.u32 8388607, %v544_v56 }
 0x111   :  { %v4191_v58 = vadd.s32 4294967169, %v652_v54  ;;  %v656_v61 = vor.u32 8388608, %v655_v55 }
 0x112   :  { %v4187_v59 = vadd.s32 4294967169, %v548_v57  ;;  %v552_v5 = vor.u32 8388608, %v5055_v62 }
 0x113   :  { %v658_v60 = vadd.s32 1, %v4191_v58  ;;  %v5057_v4 = vshll.u32 %v656_v61, 8  ;;  %v4221_v58 = vld [vmem:[%s5631_s2 + $0x30] sm:$0xff] }
 0x114   :  { %v554_v63 = vadd.s32 1, %v4187_v59  ;;  %2230 = vperm.xlu1 %4897, %v4221_v58  }
 0x115   :  { %vm659_vm2 = vcmp.gt.s32.totalorder %v658_v60, 0 }
 0x116   :  { %v660_v0 = vsel %vm659_vm2, %v658_v60, 0  ;;  %vm555_vm3 = vcmp.gt.s32.totalorder %v554_v63, 0  ;;  %vm650_vm2 = vcmp.lt.s32.totalorder %v5043_v48, 0 }
 0x117   :  { %v661_v1 = vshrl.u32 %v660_v0, 5  ;;  %v662_v2 = vand.u32 31, %v660_v0  ;;  %v556_v3 = vsel %vm555_vm3, %v554_v63, 0  ;;  %vm649_vm3 = vcmp.le.f32.partialorder %v648_v51, 0.7853982 }
 0x118   :  { %v5064_v10 = vshrl.u32 %v556_v3, 5  ;;  %v5066_v11 = vand.u32 31, %v556_v3 }
 0x119   :  { %v663_v7 = vsub.s32 32, %v662_v2  ;;  %v665_v9 = vshll.u32 %v4967_v8, %v662_v2  ;;  %v668_v13 = vshll.u32 %v4968_v12, %v662_v2  ;;  %v671_v15 = vshll.u32 %v4969_v14, %v662_v2 }
 0x11a   :  { %v674_v17 = vshll.u32 %v4970_v16, %v662_v2  ;;  %v677_v19 = vshll.u32 %v4971_v18, %v662_v2  ;;  %vm680_vm4 = vcmp.lt.s32.totalorder %v661_v1, 1  ;;  %vm681_vm5 = vcmp.lt.s32.totalorder %v661_v1, 2 }
 0x11b   :  { %v666_v21 = vshrl.u32 %v4968_v12, %v663_v7  ;;  %v669_v22 = vshrl.u32 %v4969_v14, %v663_v7  ;;  %v672_v23 = vshrl.u32 %v4970_v16, %v663_v7  ;;  %v664_v24 = vshrl.u32 %v4967_v8, %v663_v7 }
 0x11c   :  { %v675_v25 = vshrl.u32 %v4971_v18, %v663_v7  ;;  %v678_v27 = vshrl.u32 %v4972_v26, %v663_v7  ;;  %v559_v31 = vsub.s32 32, %v5066_v11  ;;  %vm682_vm6 = vcmp.lt.s32.totalorder %v661_v1, 3 }
 0x11d   :  { %v667_v28 = vor.u32 %v666_v21, %v665_v9  ;;  %v670_v29 = vor.u32 %v669_v22, %v668_v13  ;;  %v673_v30 = vor.u32 %v672_v23, %v671_v15  ;;  %vm683_vm7 = vcmp.lt.s32.totalorder %v661_v1, 4  ;;  %v4233_v21 = vld [vmem:[%s5631_s2 + $0x40] sm:$0xff] }
 0x11e   :  { %v676_v32 = vor.u32 %v675_v25, %v674_v17  ;;  %v679_v33 = vor.u32 %v678_v27, %v677_v19  ;;  %v561_v45 = vshll.u32 %v4967_v8, %v5066_v11  ;;  %v562_v49 = vshrl.u32 %v4968_v12, %v559_v31  ;;  %2965 = vperm.xlu1 %4897, %v4233_v21  }
 0x11f   :  { %v684_v35 = vsel %vm680_vm4, %v664_v24, %v667_v28  ;;  %v685_v36 = vsel %vm683_vm7, %v673_v30, 2102212464  ;;  %v688_v37 = vsel %vm680_vm4, %v667_v28, %v670_v29  ;;  %v692_v38 = vsel %vm680_vm4, %v670_v29, %v673_v30 }
 0x120   :  { %v686_v39 = vsel %vm682_vm6, %v670_v29, %v685_v36  ;;  %v689_v43 = vsel %vm683_vm7, %v676_v32, 920167782  ;;  %v693_v44 = vsel %vm683_vm7, %v679_v33, 1326507024  ;;  %v564_v52 = vshll.u32 %v4968_v12, %v5066_v11 }
 0x121   :  { %v690_v46 = vsel %vm682_vm6, %v673_v30, %v689_v43  ;;  %v694_v47 = vsel %vm682_vm6, %v676_v32, %v693_v44  ;;  %v687_v53 = vsel %vm681_vm5, %v684_v35, %v686_v39  ;;  %v565_v57 = vshrl.u32 %v4969_v14, %v559_v31 }
 0x122   :  { %v691_v54 = vsel %vm681_vm5, %v688_v37, %v690_v46  ;;  %v695_v55 = vsel %vm681_vm5, %v692_v38, %v694_v47  ;;  %v563_v0 = vor.u32 %v562_v49, %v561_v45  ;;  %v567_v1 = vshll.u32 %v4969_v14, %v5066_v11 }
 0x123   :  { %v5101_v59 = vmul.u32.u64.low %v5057_v4, %v695_v55  ;;  %v5102_v60 = vmul.u32.u64.high %v5057_v4, %v695_v55, %v5101_v59  ;;  %v5105_v61 = vmul.u32.u64.low %v5057_v4, %v691_v54  ;;  %v5106_v63 = vmul.u32.u64.high %v5057_v4, %v691_v54, %v5105_v61 }
 0x124   :  { %v566_v2 = vor.u32 %v565_v57, %v564_v52  ;;  %v568_v3 = vshrl.u32 %v4970_v16, %v559_v31  ;;  %v570_v6 = vshll.u32 %v4970_v16, %v5066_v11  ;;  %v571_v7 = vshrl.u32 %v4971_v18, %v559_v31 }
 0x125   :  { %v574_v9 = vshrl.u32 %v4972_v26, %v559_v31  ;;  %v592_v13 = vshll.u32 %v552_v5, 8  ;;  %v703_v15 = vmul.u32 %v5057_v4, %v687_v53  ;;  %v560_v17 = vshrl.u32 %v4967_v8, %v559_v31 }
 0x126   :  { %v569_v19 = vor.u32 %v568_v3, %v567_v1  ;;  %v573_v20 = vshll.u32 %v4971_v18, %v5066_v11  ;;  %vm705_vm8 = vc.u32 %v5102_v60, %v5105_v61  ;;  %v706_v22 = vadd.s32 1, %v5106_v63 }
 0x127   :  { %v572_v62 = vor.u32 %v571_v7, %v570_v6  ;;  %vm576_vm9 = vcmp.lt.s32.totalorder %v5064_v10, 1  ;;  %vm578_vm10 = vcmp.lt.s32.totalorder %v5064_v10, 3  ;;  %vm579_vm11 = vcmp.lt.s32.totalorder %v5064_v10, 4 }
 0x128   :  { %v575_v5 = vor.u32 %v574_v9, %v573_v20  ;;  %v584_v4 = vsel %vm576_vm9, %v563_v0, %v566_v2  ;;  %v707_v11 = vsel %vm705_vm8, %v706_v22, %v5106_v63  ;;  %v581_v23 = vsel %vm579_vm11, %v569_v19, 2102212464 }
 0x129   :  { %v585_v24 = vsel %vm579_vm11, %v572_v62, 920167782  ;;  %v588_v25 = vsel %vm576_vm9, %v566_v2, %v569_v19  ;;  %v708_v27 = vadd.s32 %v707_v11, %v703_v15  ;;  %vm577_vm12 = vcmp.lt.s32.totalorder %v5064_v10, 2 }
 0x12a   :  { %v586_v28 = vsel %vm578_vm10, %v569_v19, %v585_v24  ;;  %v589_v29 = vsel %vm579_vm11, %v575_v5, 1326507024  ;;  %v580_v30 = vsel %vm576_vm9, %v560_v17, %v563_v0  ;;  %v582_v31 = vsel %vm578_vm10, %v566_v2, %v581_v23 }
 0x12b   :  { %v587_v32 = vsel %vm577_vm12, %v584_v4, %v586_v28  ;;  %v590_v33 = vsel %vm578_vm10, %v572_v62, %v589_v29  ;;  %v709_v34 = vadd.s32 536870912, %v708_v27  ;;  %v583_v44 = vsel %vm577_vm12, %v580_v30, %v582_v31 }
 0x12c   :  { %v591_v35 = vsel %vm577_vm12, %v588_v25, %v590_v33  ;;  %v5133_v36 = vmul.u32.u64.low %v592_v13, %v587_v32  ;;  %v5134_v37 = vmul.u32.u64.high %v592_v13, %v587_v32, %v5133_v36  ;;  %v599_v10 = vmul.u32 %v592_v13, %v583_v44 }
 0x12d   :  { %v5136_v38 = vmul.u32.u64.low %v592_v13, %v591_v35  ;;  %v5137_v39 = vmul.u32.u64.high %v592_v13, %v591_v35, %v5136_v38  ;;  %v710_v43 = vshrl.u32 %v709_v34, 30  ;;  %v704_v3 = vadd.s32 %v5105_v61, %v5102_v60 }
 0x12e   :  { %v602_v46 = vadd.s32 1, %v5134_v37  ;;  %vm546_vm4 = vcmp.lt.s32.totalorder %v5045_v50, 0  ;;  %vm5152_vm5 = vcmp.le.f32.partialorder %v544_v56, 0.7853982  ;;  %vm740_vm9 = vweird.f32 %v5043_v48 }
 0x12f   :  { %v711_v45 = vshll.u32 %v710_v43, 30  ;;  %vm601_vm13 = vc.u32 %v5137_v39, %v5133_v36  ;;  %v600_v23 = vadd.s32 %v5133_v36, %v5137_v39  ;;  %v734_v61 = vsub.s32 4, %v710_v43 }
 0x130   :  { %v603_v49 = vsel %vm601_vm13, %v602_v46, %v5134_v37  ;;  %vm636_vm13 = vweird.f32 %v5045_v50 }
 0x131   :  { %v712_v47 = vsub.s32 %v708_v27, %v711_v45  ;;  %v604_v52 = vadd.s32 %v603_v49, %v599_v10  ;;  %v735_v34 = vsel %vm650_vm2, %v734_v61, %v710_v43 }
 0x132   :  { %v737_v37 = vsel %vm649_vm3, 0, %v735_v34 }
 0x133   :  { %v714_v53 = vsub.s32 0, %v712_v47  ;;  %v605_v54 = vadd.s32 536870912, %v604_v52  ;;  %v741_v46 = vadd.s32 3, %v737_v37 }
 0x135   :  { %v4192_v55 = vmin.u32 %v714_v53, %v712_v47  ;;  %v606_v57 = vshrl.u32 %v605_v54, 30  ;;  %v742_v49 = vand.u32 3, %v741_v46  ;;  %v4196_v53 = vld [vmem:[%s5630_s1 + $0x18] sm:$0x3] }
 0x137   :  { %v716_v58 = vclz %v4192_v55  ;;  %v607_v59 = vshll.u32 %v606_v57, 30  ;;  %v630_v45 = vsub.s32 4, %v606_v57  ;;  %vm747_vm6 = vcmp.eq.s32.totalorder %v742_v49, 2 }
 0x138   :  { %vm744_vm7 = vcmp.eq.s32.totalorder %v742_v49, 0  ;;  %vm743_vm8 = vcmp.lt.s32.totalorder %v742_v49, 2 }
 0x139   :  { %v4193_v63 = vadd.s32 4294967294, %v716_v58  ;;  %v608_v0 = vsub.s32 %v604_v52, %v607_v59  ;;  %v772_v59 = vsel %vm31_vm1, %v4196_v53, 0 }
 0x13b   :  { %vm4194_vm14 = vcmp.lt.s32.totalorder %v4193_v63, 0  ;;  %v610_v1 = vsub.s32 0, %v608_v0 }
 0x13c   :  { %v719_v2 = vsel %vm4194_vm14, 0, %v4193_v63 }
 0x13d   :  { %v720_v6 = vsub.s32 32, %v719_v2  ;;  %v724_v7 = vsub.s32 4294967266, %v719_v2  ;;  %v4188_v9 = vmin.u32 %v610_v1, %v608_v0  ;;  %v721_v13 = vshll.u32 %v712_v47, %v719_v2 }
 0x13e   :  { %v631_v47 = vsel %vm546_vm4, %v630_v45, %v606_v57  ;;  %v854_v1 = vand.u32 4294901760, %v772_v59 }
 0x13f   :  { %v722_v15 = vshrl.u32 %v704_v3, %v720_v6  ;;  %v725_v17 = vadd.s32 127, %v724_v7  ;;  %v612_v19 = vclz %v4188_v9  ;;  %v633_v55 = vsel %vm5152_vm5, 0, %v631_v47 }
 0x141   :  { %v723_v20 = vor.u32 %v722_v15, %v721_v13  ;;  %v726_v21 = vshll.u32 %v725_v17, 23  ;;  %v4189_v22 = vadd.s32 4294967294, %v612_v19  ;;  %v855_v15 = vsub.f32 %v772_v59, %v854_v1 }
 0x143   :  { %v727_v62 = vor.u32 4788187, %v726_v21  ;;  %vm4190_vm15 = vcmp.lt.s32.totalorder %v4189_v22, 0  ;;  %v730_v4 = vcvt.s32.f32 %v723_v20 }
 0x144   :  { %v615_v11 = vsel %vm4190_vm15, 0, %v4189_v22 }
 0x145   :  { %v728_v5 = vand.u32 2147483647, %v727_v62  ;;  %v616_v24 = vsub.s32 32, %v615_v11  ;;  %v620_v25 = vsub.s32 4294967266, %v615_v11  ;;  %v617_v27 = vshll.u32 %v608_v0, %v615_v11 }
 0x146   :  { %v637_v0 = vadd.s32 3, %v633_v55 }
 0x147   :  { %v731_v60 = vmul.f32 %v730_v4, %v728_v5  ;;  %v618_v28 = vshrl.u32 %v600_v23, %v616_v24  ;;  %v621_v29 = vadd.s32 127, %v620_v25  ;;  %v856_v5 = vand.u32 4294901760, %v855_v15 }
 0x148   :  { %v638_v9 = vand.u32 3, %v637_v0 }
 0x149   :  { %v732_v30 = vxor.u32 2147483648, %v731_v60  ;;  %v619_v31 = vor.u32 %v618_v28, %v617_v27  ;;  %v622_v32 = vshll.u32 %v621_v29, 23  ;;  %v857_v25 = vsub.f32 %v855_v15, %v856_v5 }
 0x14a   :  { %vm643_vm10 = vcmp.eq.s32.totalorder %v638_v9, 2  ;;  %vm640_vm11 = vcmp.eq.s32.totalorder %v638_v9, 0  ;;  %vm639_vm12 = vcmp.lt.s32.totalorder %v638_v9, 2 }
 0x14b   :  { %v733_v33 = vsel %vm650_vm2, %v732_v30, %v731_v60  ;;  %v623_v36 = vor.u32 4788187, %v622_v32  ;;  %v626_v39 = vcvt.s32.f32 %v619_v31  ;;  %v858_v28 = vand.u32 4294901760, %v857_v25 }
 0x14c   :  { %v736_v35 = vsel %vm649_vm3, %v5043_v48, %v733_v33 }
 0x14d   :  { %4898 = vcosq.f32 %v736_v35  ;;  %v624_v38 = vand.u32 2147483647, %v623_v36 }
 0x14e   :  { %4900 = vsinq.f32 %v736_v35  ;;  %v4207_v35 = vld [vmem:[%s5630_s1 + $0x20] sm:$0xff] }
 0x14f   :  { %v627_v44 = vmul.f32 %v626_v39, %v624_v38  ;;  %v1504_v36 = vsel %vm31_vm1, %v4207_v35, 0 }
 0x150   :  { %v5178_v37 = vand.u32 4294901760, %v1504_v36 }
 0x151   :  { %v628_v10 = vxor.u32 2147483648, %v627_v44 }
 0x153   :  { %v629_v43 = vsel %vm546_vm4, %v628_v10, %v627_v44 }
 0x154   :  { %v632_v52 = vsel %vm5152_vm5, %v5045_v50, %v629_v43 }
 0x155   :  { %4902 = vcosq.f32 %v632_v52 }
 0x156   :  { %4904 = vsinq.f32 %v632_v52 }
 0x157   :  { %v4899_v54 = vpop.eup %4898 }
 0x158   :  { %v4901_v56 = vpop.eup %4900  ;;  %v748_v58 = vxor.u32 2147483648, %v4899_v54 }
 0x159   :  { %v745_v57 = vxor.u32 2147483648, %v4901_v56 }
 0x15a   :  { %v749_v63 = vsel %vm747_vm6, %v748_v58, %v4901_v56 }
 0x15b   :  { %v746_v2 = vsel %vm744_vm7, %v4899_v54, %v745_v57 }
 0x15c   :  { %v750_v3 = vsel %vm743_vm8, %v746_v2, %v749_v63 }
 0x15d   :  { %v751_v6 = vsel %vm740_vm9, nan, %v750_v3 }
 0x15e   :  { %v775_v7 = vsel %vm38_vm0, %v751_v6, 0 }
 0x15f   :  { %v781_v13 = vand.u32 4294901760, %v775_v7  ;;  %v4903_v17 = vpop.eup %4902 }
 0x160   :  { %v4905_v19 = vpop.eup %4904  ;;  %v644_v20 = vxor.u32 2147483648, %v4903_v17 }
 0x161   :  { %v873_v21 = vsub.f32 %v775_v7, %v781_v13  ;;  %v641_v22 = vxor.u32 2147483648, %v4905_v19 }
 0x162   :  { %v645_v62 = vsel %vm643_vm10, %v644_v20, %v4905_v19 }
 0x163   :  { %v642_v4 = vsel %vm640_vm11, %v4903_v17, %v641_v22  ;;  %v874_v11 = vand.u32 4294901760, %v873_v21 }
 0x164   :  { %v646_v48 = vsel %vm639_vm12, %v642_v4, %v645_v62 }
 0x165   :  { %v647_v23 = vsel %vm636_vm13, nan, %v646_v48  ;;  %v875_v27 = vsub.f32 %v873_v21, %v874_v11 }
 0x166   :  { %v778_v24 = vand.u32 4294901760, %v647_v23 }
 0x167   :  { %v876_v31 = vand.u32 4294901760, %v875_v27 }
 0x168   :  { %v4660_v60 = vpack.c.bf16 %v781_v13, %v778_v24  ;;  %v866_v61 = vsub.f32 %v647_v23, %v778_v24 }
 0x16a   :  { %4661 = vmatprep.subr.bf16.mxu1 %v4660_v60  ;;  %v867_v29 = vand.u32 4294901760, %v866_v61  ;;  %v4668_v50 = vpack.c.bf16 %v873_v21, %v866_v61 }
 0x16b   :  { %4663 = vmatpush3.bf16.msra.mxu1 %v4660_v60 }
 0x16c   :  { %v868_v30 = vsub.f32 %v866_v61, %v867_v29  ;;  %v4676_v34 = vpack.c.bf16 %v874_v11, %v867_v29 }
 0x16e   :  { %4431 = vmatmul.mubr.f32.vlgmr.msra.gmra.mrb[0].mxu1 %v858_v28  ;;  %v869_v32 = vand.u32 4294901760, %v868_v30 }
 0x16f   :  { %4437 = vmatprep.mubr.f32.mxu1 %v5034_v40 }
 0x170   :  { %v4664_v33 = vpack.c.bf16 %v876_v31, %v869_v32 }
 0x172   :  { %4665 = vmatprep.subr.bf16.mxu1 %v4664_v33 }
 0x173   :  { %4667 = vmatpush3.bf16.msra.mxu1 %v4664_v33 }
 0x174   :  { %4669 = vmatprep.subr.bf16.mxu1 %v4668_v50 }
 0x176   :  { %4438 = vmatmul.mubr.f32.vlgmr.msra.gmra.mrb[0].mxu1 %v854_v1 }
 0x177   :  { %4671 = vmatpush3.bf16.msra.mxu1 %v4668_v50  ;;  %4444 = vmatprep.mubr.f32.mxu1 %v5037_v41  ;;  %v5181_v41 = vsub.f32 %v1504_v36, %v5178_v37 }
 0x178   :  { %4673 = vmatprep.subr.bf16.mxu1 %v4660_v60 }
 0x17e   :  { %4445 = vmatmul.mubr.f32.vlgmr.msra.gmra.mrb[0].mxu1 %v855_v15 }
 0x17f   :  { %4675 = vmatpush3.bf16.msra.mxu1 %v4660_v60  ;;  %4451 = vmatprep.mubr.f32.mxu1 %v846_v42  ;;  %v1581_v42 = vand.u32 4294901760, %v5181_v41 }
 0x180   :  { %4677 = vmatprep.subr.bf16.mxu1 %v4676_v34 }
 0x181   :  { %v1582_v38 = vsub.f32 %v5181_v41, %v1581_v42 }
 0x183   :  { %v1583_v39 = vand.u32 4294901760, %v1582_v38 }
 0x185   :  { %4472 = vmatprep.mubr.f32.mxu0 %v1583_v39 }
 0x186   :  { %4452 = vmatmul.mubr.f32.vlgmr.msra.gmra.mrb[0].mxu1 %v856_v5 }
 0x187   :  { %4679 = vmatpush3.bf16.msra.mxu1 %v4676_v34  ;;  %4458 = vmatprep.mubr.f32.mxu1 %v5034_v40 }
 0x188   :  { %4681 = vmatprep.subr.bf16.mxu1 %v4660_v60 }
 0x18e   :  { %4459 = vmatmul.mubr.f32.vlgmr.msra.gmra.mrb[0].mxu1 %v854_v1 }
 0x18f   :  { %4683 = vmatpush3.bf16.msra.mxu1 %v4660_v60  ;;  %4465 = vmatprep.mubr.f32.mxu1 %v5034_v40  ;;  %v766_v40 = vpop.permute.xlu1 %765 }
 0x193   :  { %v761_v45 = vpop.permute.xlu1 %760 }
 0x196   :  { %4466 = vmatmul.mubr.f32.vlgmr.msra.gmra.mrb[0].mxu1 %v854_v1 }
 0x269   :  { %v4467_v44 = vpop.f32.mrb[0].mxu1 }
 0x26a   :  { %v5187_v46 = vadd.f32 %v4467_v44, %v766_v40  ;;  %v1269_v10 = vpop.f32.mrb[1].mxu1 }
 0x26b   :  { %v5189_v51 = vadd.f32 %v1269_v10, %v761_v45 }
 0x26c   :  { %v1383_v43 = vand.u32 2147483647, %v5187_v46  ;;  %v1386_v47 = vand.u32 2139095040, %v5187_v46 }
 0x26d   :  { %v1282_v49 = vand.u32 2139095040, %v5189_v51  ;;  %v1279_v54 = vand.u32 2147483647, %v5189_v51 }
 0x26e   :  { %v1387_v52 = vshrl.u32 %v1386_v47, 23  ;;  %v1390_v53 = vand.u32 8388607, %v1383_v43 }
 0x26f   :  { %v1283_v55 = vshrl.u32 %v1282_v49, 23  ;;  %v1286_v63 = vand.u32 8388607, %v1279_v54 }
 0x270   :  { %v4203_v56 = vadd.s32 4294967169, %v1387_v52  ;;  %v1391_v57 = vor.u32 8388608, %v1390_v53 }
 0x271   :  { %v4199_v58 = vadd.s32 4294967169, %v1283_v55  ;;  %v1287_v9 = vor.u32 8388608, %v1286_v63 }
 0x272   :  { %v1393_v59 = vadd.s32 1, %v4203_v56  ;;  %v5199_v7 = vshll.u32 %v1391_v57, 8 }
 0x273   :  { %v1289_v0 = vadd.s32 1, %v4199_v58 }
 0x274   :  { %vm1394_vm14 = vcmp.gt.s32.totalorder %v1393_v59, 0 }
 0x275   :  { %v1395_v2 = vsel %vm1394_vm14, %v1393_v59, 0  ;;  %vm1290_vm15 = vcmp.gt.s32.totalorder %v1289_v0, 0  ;;  %vm1385_vm14 = vcmp.lt.s32.totalorder %v5187_v46, 0 }
 0x276   :  { %v1396_v1 = vshrl.u32 %v1395_v2, 5  ;;  %v1397_v3 = vand.u32 31, %v1395_v2  ;;  %v1291_v6 = vsel %vm1290_vm15, %v1289_v0, 0  ;;  %vm1384_vm15 = vcmp.le.f32.partialorder %v1383_v43, 0.7853982 }
 0x277   :  { %v5202_v17 = vshrl.u32 %v1291_v6, 5  ;;  %v1293_v19 = vand.u32 31, %v1291_v6 }
 0x278   :  { %v1398_v13 = vsub.s32 32, %v1397_v3  ;;  %v1400_v15 = vshll.u32 %v4967_v8, %v1397_v3  ;;  %v1403_v20 = vshll.u32 %v4968_v12, %v1397_v3  ;;  %v1406_v21 = vshll.u32 %v4969_v14, %v1397_v3 }
 0x279   :  { %v1409_v22 = vshll.u32 %v4970_v16, %v1397_v3  ;;  %v1412_v62 = vshll.u32 %v4971_v18, %v1397_v3  ;;  %vm1415_vm2 = vcmp.lt.s32.totalorder %v1396_v1, 1  ;;  %vm1416_vm3 = vcmp.lt.s32.totalorder %v1396_v1, 2 }
 0x27a   :  { %v1401_v5 = vshrl.u32 %v4968_v12, %v1398_v13  ;;  %v1404_v4 = vshrl.u32 %v4969_v14, %v1398_v13  ;;  %v1407_v48 = vshrl.u32 %v4970_v16, %v1398_v13  ;;  %v1399_v11 = vshrl.u32 %v4967_v8, %v1398_v13 }
 0x27b   :  { %v1410_v23 = vshrl.u32 %v4971_v18, %v1398_v13  ;;  %v1413_v24 = vshrl.u32 %v4972_v26, %v1398_v13  ;;  %v1294_v27 = vsub.s32 32, %v1293_v19  ;;  %vm1417_vm4 = vcmp.lt.s32.totalorder %v1396_v1, 3 }
 0x27c   :  { %v1402_v25 = vor.u32 %v1401_v5, %v1400_v15  ;;  %v1405_v60 = vor.u32 %v1404_v4, %v1403_v20  ;;  %v1408_v61 = vor.u32 %v1407_v48, %v1406_v21  ;;  %vm1418_vm5 = vcmp.lt.s32.totalorder %v1396_v1, 4 }
 0x27d   :  { %v1411_v28 = vor.u32 %v1410_v23, %v1409_v22  ;;  %v1414_v29 = vor.u32 %v1413_v24, %v1412_v62  ;;  %v1296_v36 = vshll.u32 %v4967_v8, %v1293_v19  ;;  %v1297_v40 = vshrl.u32 %v4968_v12, %v1294_v27 }
 0x27e   :  { %v1419_v30 = vsel %vm1415_vm2, %v1399_v11, %v1402_v25  ;;  %v1420_v31 = vsel %vm1418_vm5, %v1408_v61, 2102212464  ;;  %v1423_v32 = vsel %vm1415_vm2, %v1402_v25, %v1405_v60  ;;  %v1427_v33 = vsel %vm1415_vm2, %v1405_v60, %v1408_v61 }
 0x27f   :  { %v1421_v50 = vsel %vm1417_vm4, %v1405_v60, %v1420_v31  ;;  %v1424_v34 = vsel %vm1418_vm5, %v1411_v28, 920167782  ;;  %v1428_v35 = vsel %vm1418_vm5, %v1414_v29, 1326507024  ;;  %v1299_v44 = vshll.u32 %v4968_v12, %v1293_v19 }
 0x280   :  { %v1425_v38 = vsel %vm1417_vm4, %v1408_v61, %v1424_v34  ;;  %v1429_v39 = vsel %vm1417_vm4, %v1411_v28, %v1428_v35  ;;  %v1422_v45 = vsel %vm1416_vm3, %v1419_v30, %v1421_v50  ;;  %v1300_v49 = vshrl.u32 %v4969_v14, %v1294_v27 }
 0x281   :  { %v1426_v10 = vsel %vm1416_vm3, %v1423_v32, %v1425_v38  ;;  %v1430_v47 = vsel %vm1416_vm3, %v1427_v33, %v1429_v39  ;;  %v1298_v58 = vor.u32 %v1297_v40, %v1296_v36  ;;  %v1302_v57 = vshll.u32 %v4969_v14, %v1293_v19 }
 0x282   :  { %v5225_v52 = vmul.u32.u64.low %v5199_v7, %v1430_v47  ;;  %v5226_v53 = vmul.u32.u64.high %v5199_v7, %v1430_v47, %v5225_v52  ;;  %v5229_v55 = vmul.u32.u64.low %v5199_v7, %v1426_v10  ;;  %v5230_v56 = vmul.u32.u64.high %v5199_v7, %v1426_v10, %v5229_v55 }
 0x283   :  { %v1301_v59 = vor.u32 %v1300_v49, %v1299_v44  ;;  %v1303_v63 = vshrl.u32 %v4970_v16, %v1294_v27  ;;  %v1305_v0 = vshll.u32 %v4970_v16, %v1293_v19  ;;  %v1306_v2 = vshrl.u32 %v4971_v18, %v1294_v27 }
 0x284   :  { %v1309_v1 = vshrl.u32 %v4972_v26, %v1294_v27  ;;  %v1327_v3 = vshll.u32 %v1287_v9, 8  ;;  %v1438_v6 = vmul.u32 %v5199_v7, %v1422_v45  ;;  %v1295_v13 = vshrl.u32 %v4967_v8, %v1294_v27 }
 0x285   :  { %v1304_v15 = vor.u32 %v1303_v63, %v1302_v57  ;;  %v1308_v20 = vshll.u32 %v4971_v18, %v1293_v19  ;;  %vm1440_vm6 = vc.u32 %v5226_v53, %v5229_v55  ;;  %v1441_v21 = vadd.s32 1, %v5230_v56 }
 0x286   :  { %v1307_v22 = vor.u32 %v1306_v2, %v1305_v0  ;;  %vm1311_vm7 = vcmp.lt.s32.totalorder %v5202_v17, 1  ;;  %vm1313_vm8 = vcmp.lt.s32.totalorder %v5202_v17, 3  ;;  %vm1314_vm9 = vcmp.lt.s32.totalorder %v5202_v17, 4 }
 0x287   :  { %v1310_v62 = vor.u32 %v1309_v1, %v1308_v20  ;;  %v1319_v9 = vsel %vm1311_vm7, %v1298_v58, %v1301_v59  ;;  %v1442_v7 = vsel %vm1440_vm6, %v1441_v21, %v5230_v56  ;;  %v1316_v5 = vsel %vm1314_vm9, %v1304_v15, 2102212464 }
 0x288   :  { %v1320_v4 = vsel %vm1314_vm9, %v1307_v22, 920167782  ;;  %v1323_v48 = vsel %vm1311_vm7, %v1301_v59, %v1304_v15  ;;  %v1443_v11 = vadd.s32 %v1442_v7, %v1438_v6  ;;  %vm1312_vm10 = vcmp.lt.s32.totalorder %v5202_v17, 2 }
 0x289   :  { %v1321_v19 = vsel %vm1313_vm8, %v1304_v15, %v1320_v4  ;;  %v1324_v23 = vsel %vm1314_vm9, %v1310_v62, 1326507024  ;;  %v1315_v24 = vsel %vm1311_vm7, %v1295_v13, %v1298_v58  ;;  %v1317_v25 = vsel %vm1313_vm8, %v1301_v59, %v1316_v5 }
 0x28a   :  { %v1322_v60 = vsel %vm1312_vm10, %v1319_v9, %v1321_v19  ;;  %v1325_v61 = vsel %vm1313_vm8, %v1307_v22, %v1324_v23  ;;  %v1444_v27 = vadd.s32 536870912, %v1443_v11  ;;  %v1318_v50 = vsel %vm1312_vm10, %v1315_v24, %v1317_v25 }
 0x28b   :  { %v1326_v28 = vsel %vm1312_vm10, %v1323_v48, %v1325_v61  ;;  %v5247_v29 = vmul.u32.u64.low %v1327_v3, %v1322_v60  ;;  %v5248_v30 = vmul.u32.u64.high %v1327_v3, %v1322_v60, %v5247_v29  ;;  %v1334_v17 = vmul.u32 %v1327_v3, %v1318_v50 }
 0x28c   :  { %v5250_v31 = vmul.u32.u64.low %v1327_v3, %v1326_v28  ;;  %v5251_v32 = vmul.u32.u64.high %v1327_v3, %v1326_v28, %v5250_v31  ;;  %v1445_v33 = vshrl.u32 %v1444_v27, 30  ;;  %v1439_v57 = vadd.s32 %v5229_v55, %v5226_v53 }
 0x28d   :  { %v1337_v35 = vadd.s32 1, %v5248_v30  ;;  %vm1281_vm2 = vcmp.lt.s32.totalorder %v5189_v51, 0  ;;  %vm5265_vm3 = vcmp.le.f32.partialorder %v1279_v54, 0.7853982  ;;  %vm1475_vm7 = vweird.f32 %v5187_v46 }
 0x28e   :  { %v1446_v34 = vshll.u32 %v1445_v33, 30  ;;  %vm1336_vm11 = vc.u32 %v5251_v32, %v5247_v29  ;;  %v1335_v5 = vadd.s32 %v5247_v29, %v5251_v32  ;;  %v1469_v55 = vsub.s32 4, %v1445_v33 }
 0x28f   :  { %v1338_v38 = vsel %vm1336_vm11, %v1337_v35, %v5248_v30  ;;  %vm1371_vm11 = vweird.f32 %v5189_v51 }
 0x290   :  { %v1447_v36 = vsub.s32 %v1443_v11, %v1446_v34  ;;  %v1339_v39 = vadd.s32 %v1338_v38, %v1334_v17  ;;  %v1470_v27 = vsel %vm1385_vm14, %v1469_v55, %v1445_v33 }
 0x291   :  { %v1472_v30 = vsel %vm1384_vm15, 0, %v1470_v27 }
 0x292   :  { %v1449_v40 = vsub.s32 0, %v1447_v36  ;;  %v1340_v44 = vadd.s32 536870912, %v1339_v39  ;;  %v1476_v35 = vadd.s32 3, %v1472_v30 }
 0x294   :  { %v4204_v45 = vmin.u32 %v1449_v40, %v1447_v36  ;;  %v1341_v10 = vshrl.u32 %v1340_v44, 30  ;;  %v1477_v38 = vand.u32 3, %v1476_v35  ;;  %v4208_v40 = vld [vmem:[%s5630_s1 + $0x28] sm:$0x3] }
 0x296   :  { %v1451_v47 = vclz %v4204_v45  ;;  %v1342_v49 = vshll.u32 %v1341_v10, 30  ;;  %v1365_v34 = vsub.s32 4, %v1341_v10  ;;  %vm1482_vm4 = vcmp.eq.s32.totalorder %v1477_v38, 2 }
 0x297   :  { %vm1479_vm5 = vcmp.eq.s32.totalorder %v1477_v38, 0  ;;  %vm1478_vm6 = vcmp.lt.s32.totalorder %v1477_v38, 2 }
 0x298   :  { %v4205_v52 = vadd.s32 4294967294, %v1451_v47  ;;  %v1343_v56 = vsub.s32 %v1339_v39, %v1342_v49  ;;  %v1507_v49 = vsel %vm31_vm1, %v4208_v40, 0 }
 0x29a   :  { %vm4206_vm12 = vcmp.lt.s32.totalorder %v4205_v52, 0  ;;  %v1345_v59 = vsub.s32 0, %v1343_v56 }
 0x29b   :  { %v1454_v58 = vsel %vm4206_vm12, 0, %v4205_v52 }
 0x29c   :  { %v1455_v63 = vsub.s32 32, %v1454_v58  ;;  %v1459_v0 = vsub.s32 4294967266, %v1454_v58  ;;  %v4200_v2 = vmin.u32 %v1345_v59, %v1343_v56  ;;  %v1456_v1 = vshll.u32 %v1447_v36, %v1454_v58 }
 0x29d   :  { %v1366_v36 = vsel %vm1281_vm2, %v1365_v34, %v1341_v10  ;;  %v1589_v59 = vand.u32 4294901760, %v1507_v49  ;;  %v1496_v34 = vpop.permute.xlu1 %1495 }
 0x29e   :  { %v1457_v3 = vshrl.u32 %v1439_v57, %v1455_v63  ;;  %v1460_v6 = vadd.s32 127, %v1459_v0  ;;  %v1347_v13 = vclz %v4200_v2  ;;  %v1368_v45 = vsel %vm5265_vm3, 0, %v1366_v36 }
 0x2a0   :  { %v1458_v15 = vor.u32 %v1457_v3, %v1456_v1  ;;  %v1461_v20 = vshll.u32 %v1460_v6, 23  ;;  %v4201_v21 = vadd.s32 4294967294, %v1347_v13  ;;  %v1590_v3 = vsub.f32 %v1507_v49, %v1589_v59 }
 0x2a2   :  { %v1462_v22 = vor.u32 4788187, %v1461_v20  ;;  %vm4202_vm13 = vcmp.lt.s32.totalorder %v4201_v21, 0  ;;  %v1465_v9 = vcvt.s32.f32 %v1458_v15 }
 0x2a3   :  { %v1350_v7 = vsel %vm4202_vm13, 0, %v4201_v21 }
 0x2a4   :  { %v1463_v62 = vand.u32 2147483647, %v1462_v22  ;;  %v1351_v4 = vsub.s32 32, %v1350_v7  ;;  %v1355_v48 = vsub.s32 4294967266, %v1350_v7  ;;  %v1352_v11 = vshll.u32 %v1343_v56, %v1350_v7 }
 0x2a5   :  { %v1372_v56 = vadd.s32 3, %v1368_v45 }
 0x2a6   :  { %v1466_v53 = vmul.f32 %v1465_v9, %v1463_v62  ;;  %v1353_v19 = vshrl.u32 %v1335_v5, %v1351_v4  ;;  %v1356_v23 = vadd.s32 127, %v1355_v48  ;;  %v1591_v62 = vand.u32 4294901760, %v1590_v3 }
 0x2a7   :  { %v1373_v2 = vand.u32 3, %v1372_v56 }
 0x2a8   :  { %v1467_v24 = vxor.u32 2147483648, %v1466_v53  ;;  %v1354_v25 = vor.u32 %v1353_v19, %v1352_v11  ;;  %v1357_v60 = vshll.u32 %v1356_v23, 23  ;;  %v1592_v48 = vsub.f32 %v1590_v3, %v1591_v62 }
 0x2a9   :  { %vm1378_vm8 = vcmp.eq.s32.totalorder %v1373_v2, 2  ;;  %vm1375_vm9 = vcmp.eq.s32.totalorder %v1373_v2, 0  ;;  %vm1374_vm10 = vcmp.lt.s32.totalorder %v1373_v2, 2 }
 0x2aa   :  { %v1468_v61 = vsel %vm1385_vm14, %v1467_v24, %v1466_v53  ;;  %v1358_v29 = vor.u32 4788187, %v1357_v60  ;;  %v1361_v32 = vcvt.s32.f32 %v1354_v25  ;;  %v1593_v19 = vand.u32 4294901760, %v1592_v48 }
 0x2ab   :  { %v1471_v28 = vsel %vm1384_vm15, %v5187_v46, %v1468_v61 }
 0x2ac   :  { %4906 = vcosq.f32 %v1471_v28  ;;  %v1359_v31 = vand.u32 2147483647, %v1358_v29 }
 0x2ad   :  { %4908 = vsinq.f32 %v1471_v28  ;;  %v4219_v28 = vld [vmem:[%s5630_s1 + $0x30] sm:$0xff] }
 0x2ae   :  { %v1362_v50 = vmul.f32 %v1361_v32, %v1359_v31  ;;  %v2239_v29 = vsel %vm31_vm1, %v4219_v28, 0 }
 0x2af   :  { %v5291_v30 = vand.u32 4294901760, %v2239_v29 }
 0x2b0   :  { %v1363_v17 = vxor.u32 2147483648, %v1362_v50 }
 0x2b2   :  { %v1364_v33 = vsel %vm1281_vm2, %v1363_v17, %v1362_v50 }
 0x2b3   :  { %v1367_v39 = vsel %vm5265_vm3, %v5189_v51, %v1364_v33 }
 0x2b4   :  { %4910 = vcosq.f32 %v1367_v39 }
 0x2b5   :  { %4912 = vsinq.f32 %v1367_v39 }
 0x2b6   :  { %v4907_v44 = vpop.eup %4906 }
 0x2b7   :  { %v4909_v54 = vpop.eup %4908  ;;  %v1483_v47 = vxor.u32 2147483648, %v4907_v44 }
 0x2b8   :  { %v1480_v10 = vxor.u32 2147483648, %v4909_v54 }
 0x2b9   :  { %v1484_v52 = vsel %vm1482_vm4, %v1483_v47, %v4909_v54 }
 0x2ba   :  { %v1481_v58 = vsel %vm1479_vm5, %v4907_v44, %v1480_v10 }
 0x2bb   :  { %v1485_v57 = vsel %vm1478_vm6, %v1481_v58, %v1484_v52 }
 0x2bc   :  { %v1486_v63 = vsel %vm1475_vm7, nan, %v1485_v57 }
 0x2bd   :  { %v1510_v0 = vsel %vm38_vm0, %v1486_v63, 0 }
 0x2be   :  { %v1516_v1 = vand.u32 4294901760, %v1510_v0  ;;  %v4911_v6 = vpop.eup %4910 }
 0x2bf   :  { %v4913_v13 = vpop.eup %4912  ;;  %v1379_v15 = vxor.u32 2147483648, %v4911_v6 }
 0x2c0   :  { %v1608_v20 = vsub.f32 %v1510_v0, %v1516_v1  ;;  %v1376_v21 = vxor.u32 2147483648, %v4913_v13 }
 0x2c1   :  { %v1380_v22 = vsel %vm1378_vm8, %v1379_v15, %v4913_v13 }
 0x2c2   :  { %v1377_v9 = vsel %vm1375_vm9, %v4911_v6, %v1376_v21  ;;  %v1609_v7 = vand.u32 4294901760, %v1608_v20 }
 0x2c3   :  { %v1381_v46 = vsel %vm1374_vm10, %v1377_v9, %v1380_v22 }
 0x2c4   :  { %v1382_v5 = vsel %vm1371_vm11, nan, %v1381_v46  ;;  %v1610_v11 = vsub.f32 %v1608_v20, %v1609_v7 }
 0x2c5   :  { %v1513_v4 = vand.u32 4294901760, %v1382_v5 }
 0x2c6   :  { %v1611_v25 = vand.u32 4294901760, %v1610_v11 }
 0x2c7   :  { %v4684_v53 = vpack.c.bf16 %v1516_v1, %v1513_v4  ;;  %v1601_v55 = vsub.f32 %v1382_v5, %v1513_v4 }
 0x2c9   :  { %4685 = vmatprep.subr.bf16.mxu0 %v4684_v53  ;;  %v1602_v23 = vand.u32 4294901760, %v1601_v55  ;;  %v4692_v51 = vpack.c.bf16 %v1608_v20, %v1601_v55 }
 0x2ca   :  { %4687 = vmatpush3.bf16.msra.mxu0 %v4684_v53 }
 0x2cb   :  { %v1603_v24 = vsub.f32 %v1601_v55, %v1602_v23  ;;  %v4700_v27 = vpack.c.bf16 %v1609_v7, %v1602_v23 }
 0x2cd   :  { %4473 = vmatmul.mubr.f32.vlgmr.msra.gmra.mrb[2].mxu0 %v1593_v19  ;;  %v1604_v60 = vand.u32 4294901760, %v1603_v24 }
 0x2ce   :  { %4479 = vmatprep.mubr.f32.mxu0 %v5178_v37 }
 0x2cf   :  { %v4688_v61 = vpack.c.bf16 %v1611_v25, %v1604_v60 }
 0x2d1   :  { %4689 = vmatprep.subr.bf16.mxu0 %v4688_v61 }
 0x2d2   :  { %4691 = vmatpush3.bf16.msra.mxu0 %v4688_v61 }
 0x2d3   :  { %4693 = vmatprep.subr.bf16.mxu0 %v4692_v51 }
 0x2d5   :  { %4480 = vmatmul.mubr.f32.vlgmr.msra.gmra.mrb[2].mxu0 %v1589_v59 }
 0x2d6   :  { %4695 = vmatpush3.bf16.msra.mxu0 %v4692_v51  ;;  %4486 = vmatprep.mubr.f32.mxu0 %v5181_v41  ;;  %v5294_v41 = vsub.f32 %v2239_v29, %v5291_v30 }
 0x2d7   :  { %4697 = vmatprep.subr.bf16.mxu0 %v4684_v53 }
 0x2dd   :  { %4487 = vmatmul.mubr.f32.vlgmr.msra.gmra.mrb[2].mxu0 %v1590_v3 }
 0x2de   :  { %4699 = vmatpush3.bf16.msra.mxu0 %v4684_v53  ;;  %4493 = vmatprep.mubr.f32.mxu0 %v1581_v42  ;;  %v2316_v42 = vand.u32 4294901760, %v5294_v41 }
 0x2df   :  { %4701 = vmatprep.subr.bf16.mxu0 %v4700_v27 }
 0x2e0   :  { %v2317_v31 = vsub.f32 %v5294_v41, %v2316_v42 }
 0x2e2   :  { %v2318_v32 = vand.u32 4294901760, %v2317_v31 }
 0x2e4   :  { %4514 = vmatprep.mubr.f32.mxu1 %v2318_v32 }
 0x2e5   :  { %4494 = vmatmul.mubr.f32.vlgmr.msra.gmra.mrb[2].mxu0 %v1591_v62 }
 0x2e6   :  { %4703 = vmatpush3.bf16.msra.mxu0 %v4700_v27  ;;  %4500 = vmatprep.mubr.f32.mxu0 %v5178_v37 }
 0x2e7   :  { %4705 = vmatprep.subr.bf16.mxu0 %v4684_v53 }
 0x2ed   :  { %4501 = vmatmul.mubr.f32.vlgmr.msra.gmra.mrb[2].mxu0 %v1589_v59 }
 0x2ee   :  { %4707 = vmatpush3.bf16.msra.mxu0 %v4684_v53  ;;  %4507 = vmatprep.mubr.f32.mxu0 %v5178_v37  ;;  %v1501_v37 = vpop.permute.xlu0 %1500 }
 0x2f5   :  { %4508 = vmatmul.mubr.f32.vlgmr.msra.gmra.mrb[2].mxu0 %v1589_v59 }
 0x3c8   :  { %v4509_v50 = vpop.f32.mrb[2].mxu0 }
 0x3c9   :  { %v5300_v35 = vadd.f32 %v4509_v50, %v1501_v37  ;;  %v2004_v17 = vpop.f32.mrb[3].mxu0 }
 0x3ca   :  { %v5302_v43 = vadd.f32 %v2004_v17, %v1496_v34 }
 0x3cb   :  { %v2118_v33 = vand.u32 2147483647, %v5300_v35  ;;  %v2121_v36 = vand.u32 2139095040, %v5300_v35 }
 0x3cc   :  { %v2017_v38 = vand.u32 2139095040, %v5302_v43  ;;  %v2014_v44 = vand.u32 2147483647, %v5302_v43 }
 0x3cd   :  { %v2122_v39 = vshrl.u32 %v2121_v36, 23  ;;  %v2125_v40 = vand.u32 8388607, %v2118_v33 }
 0x3ce   :  { %v2018_v45 = vshrl.u32 %v2017_v38, 23  ;;  %v2021_v52 = vand.u32 8388607, %v2014_v44 }
 0x3cf   :  { %v4215_v54 = vadd.s32 4294967169, %v2122_v39  ;;  %v2126_v10 = vor.u32 8388608, %v2125_v40 }
 0x3d0   :  { %v4211_v47 = vadd.s32 4294967169, %v2018_v45  ;;  %v2022_v2 = vor.u32 8388608, %v2021_v52 }
 0x3d1   :  { %v2128_v49 = vadd.s32 1, %v4215_v54  ;;  %v5312_v0 = vshll.u32 %v2126_v10, 8 }
 0x3d2   :  { %v2024_v56 = vadd.s32 1, %v4211_v47 }
 0x3d3   :  { %vm2129_vm12 = vcmp.gt.s32.totalorder %v2128_v49, 0 }
 0x3d4   :  { %v2130_v58 = vsel %vm2129_vm12, %v2128_v49, 0  ;;  %vm2025_vm13 = vcmp.gt.s32.totalorder %v2024_v56, 0  ;;  %vm2120_vm12 = vcmp.lt.s32.totalorder %v5300_v35, 0 }
 0x3d5   :  { %v2131_v59 = vshrl.u32 %v2130_v58, 5  ;;  %v2132_v57 = vand.u32 31, %v2130_v58  ;;  %v2026_v63 = vsel %vm2025_vm13, %v2024_v56, 0  ;;  %vm2119_vm13 = vcmp.le.f32.partialorder %v2118_v33, 0.7853982 }
 0x3d6   :  { %v5315_v6 = vshrl.u32 %v2026_v63, 5  ;;  %v2028_v13 = vand.u32 31, %v2026_v63 }
 0x3d7   :  { %v2133_v1 = vsub.s32 32, %v2132_v57  ;;  %v2135_v3 = vshll.u32 %v4967_v8, %v2132_v57  ;;  %v2138_v15 = vshll.u32 %v4968_v12, %v2132_v57  ;;  %v2141_v20 = vshll.u32 %v4969_v14, %v2132_v57 }
 0x3d8   :  { %v2144_v21 = vshll.u32 %v4970_v16, %v2132_v57  ;;  %v2147_v22 = vshll.u32 %v4971_v18, %v2132_v57  ;;  %vm2150_vm14 = vcmp.lt.s32.totalorder %v2131_v59, 1  ;;  %vm2151_vm15 = vcmp.lt.s32.totalorder %v2131_v59, 2 }
 0x3d9   :  { %v2136_v62 = vshrl.u32 %v4968_v12, %v2133_v1  ;;  %v2139_v9 = vshrl.u32 %v4969_v14, %v2133_v1  ;;  %v2142_v46 = vshrl.u32 %v4970_v16, %v2133_v1  ;;  %v2134_v7 = vshrl.u32 %v4967_v8, %v2133_v1 }
 0x3da   :  { %v2145_v5 = vshrl.u32 %v4971_v18, %v2133_v1  ;;  %v2148_v4 = vshrl.u32 %v4972_v26, %v2133_v1  ;;  %v2029_v11 = vsub.s32 32, %v2028_v13  ;;  %vm2152_vm2 = vcmp.lt.s32.totalorder %v2131_v59, 3 }
 0x3db   :  { %v2137_v48 = vor.u32 %v2136_v62, %v2135_v3  ;;  %v2140_v53 = vor.u32 %v2139_v9, %v2138_v15  ;;  %v2143_v55 = vor.u32 %v2142_v46, %v2141_v20  ;;  %vm2153_vm3 = vcmp.lt.s32.totalorder %v2131_v59, 4 }
 0x3dc   :  { %v2146_v19 = vor.u32 %v2145_v5, %v2144_v21  ;;  %v2149_v23 = vor.u32 %v2148_v4, %v2147_v22  ;;  %v2031_v29 = vshll.u32 %v4967_v8, %v2028_v13  ;;  %v2032_v37 = vshrl.u32 %v4968_v12, %v2029_v11 }
 0x3dd   :  { %v2154_v24 = vsel %vm2150_vm14, %v2134_v7, %v2137_v48  ;;  %v2155_v25 = vsel %vm2153_vm3, %v2143_v55, 2102212464  ;;  %v2158_v60 = vsel %vm2150_vm14, %v2137_v48, %v2140_v53  ;;  %v2162_v61 = vsel %vm2150_vm14, %v2140_v53, %v2143_v55 }
 0x3de   :  { %v2156_v51 = vsel %vm2152_vm2, %v2140_v53, %v2155_v25  ;;  %v2159_v27 = vsel %vm2153_vm3, %v2146_v19, 920167782  ;;  %v2163_v28 = vsel %vm2153_vm3, %v2149_v23, 1326507024  ;;  %v2034_v50 = vshll.u32 %v4968_v12, %v2028_v13 }
 0x3df   :  { %v2160_v31 = vsel %vm2152_vm2, %v2143_v55, %v2159_v27  ;;  %v2164_v32 = vsel %vm2152_vm2, %v2146_v19, %v2163_v28  ;;  %v2157_v34 = vsel %vm2151_vm15, %v2154_v24, %v2156_v51  ;;  %v2035_v38 = vshrl.u32 %v4969_v14, %v2029_v11 }
 0x3e0   :  { %v2161_v17 = vsel %vm2151_vm15, %v2158_v60, %v2160_v31  ;;  %v2165_v36 = vsel %vm2151_vm15, %v2162_v61, %v2164_v32  ;;  %v2033_v47 = vor.u32 %v2032_v37, %v2031_v29  ;;  %v2037_v10 = vshll.u32 %v4969_v14, %v2028_v13 }
 0x3e1   :  { %v5338_v39 = vmul.u32.u64.low %v5312_v0, %v2165_v36  ;;  %v5339_v40 = vmul.u32.u64.high %v5312_v0, %v2165_v36, %v5338_v39  ;;  %v5342_v45 = vmul.u32.u64.low %v5312_v0, %v2161_v17  ;;  %v5343_v54 = vmul.u32.u64.high %v5312_v0, %v2161_v17, %v5342_v45 }
 0x3e2   :  { %v2036_v49 = vor.u32 %v2035_v38, %v2034_v50  ;;  %v2038_v52 = vshrl.u32 %v4970_v16, %v2029_v11  ;;  %v2040_v56 = vshll.u32 %v4970_v16, %v2028_v13  ;;  %v2041_v58 = vshrl.u32 %v4971_v18, %v2029_v11 }
 0x3e3   :  { %v2044_v59 = vshrl.u32 %v4972_v26, %v2029_v11  ;;  %v2062_v57 = vshll.u32 %v2022_v2, 8  ;;  %v2173_v63 = vmul.u32 %v5312_v0, %v2157_v34  ;;  %v2030_v1 = vshrl.u32 %v4967_v8, %v2029_v11 }
 0x3e4   :  { %v2039_v3 = vor.u32 %v2038_v52, %v2037_v10  ;;  %v2043_v15 = vshll.u32 %v4971_v18, %v2028_v13  ;;  %vm2175_vm4 = vc.u32 %v5339_v40, %v5342_v45  ;;  %v2176_v20 = vadd.s32 1, %v5343_v54 }
 0x3e5   :  { %v2042_v21 = vor.u32 %v2041_v58, %v2040_v56  ;;  %vm2046_vm5 = vcmp.lt.s32.totalorder %v5315_v6, 1  ;;  %vm2048_vm6 = vcmp.lt.s32.totalorder %v5315_v6, 3  ;;  %vm2049_vm7 = vcmp.lt.s32.totalorder %v5315_v6, 4 }
 0x3e6   :  { %v2045_v22 = vor.u32 %v2044_v59, %v2043_v15  ;;  %v2054_v2 = vsel %vm2046_vm5, %v2033_v47, %v2036_v49  ;;  %v2177_v0 = vsel %vm2175_vm4, %v2176_v20, %v5343_v54  ;;  %v2051_v62 = vsel %vm2049_vm7, %v2039_v3, 2102212464 }
 0x3e7   :  { %v2055_v9 = vsel %vm2049_vm7, %v2042_v21, 920167782  ;;  %v2058_v46 = vsel %vm2046_vm5, %v2036_v49, %v2039_v3  ;;  %v2178_v7 = vadd.s32 %v2177_v0, %v2173_v63  ;;  %vm2047_vm8 = vcmp.lt.s32.totalorder %v5315_v6, 2 }
 0x3e8   :  { %v2056_v13 = vsel %vm2048_vm6, %v2039_v3, %v2055_v9  ;;  %v2059_v5 = vsel %vm2049_vm7, %v2045_v22, 1326507024  ;;  %v2050_v4 = vsel %vm2046_vm5, %v2030_v1, %v2033_v47  ;;  %v2052_v48 = vsel %vm2048_vm6, %v2036_v49, %v2051_v62 }
 0x3e9   :  { %v2057_v53 = vsel %vm2047_vm8, %v2054_v2, %v2056_v13  ;;  %v2060_v55 = vsel %vm2048_vm6, %v2042_v21, %v2059_v5  ;;  %v2179_v11 = vadd.s32 536870912, %v2178_v7  ;;  %v2053_v51 = vsel %vm2047_vm8, %v2050_v4, %v2052_v48 }
 0x3ea   :  { %v2061_v19 = vsel %vm2047_vm8, %v2058_v46, %v2060_v55  ;;  %v5360_v23 = vmul.u32.u64.low %v2062_v57, %v2057_v53  ;;  %v5361_v24 = vmul.u32.u64.high %v2062_v57, %v2057_v53, %v5360_v23  ;;  %v2069_v6 = vmul.u32 %v2062_v57, %v2053_v51 }
 0x3eb   :  { %v5363_v25 = vmul.u32.u64.low %v2062_v57, %v2061_v19  ;;  %v5364_v60 = vmul.u32.u64.high %v2062_v57, %v2061_v19, %v5363_v25  ;;  %v2180_v61 = vshrl.u32 %v2179_v11, 30  ;;  %v2174_v10 = vadd.s32 %v5342_v45, %v5339_v40 }
 0x3ec   :  { %v2072_v28 = vadd.s32 1, %v5361_v24  ;;  %vm2016_vm14 = vcmp.lt.s32.totalorder %v5302_v43, 0  ;;  %vm5378_vm15 = vcmp.le.f32.partialorder %v2014_v44, 0.7853982  ;;  %vm2210_vm5 = vweird.f32 %v5300_v35 }
 0x3ed   :  { %v2181_v27 = vshll.u32 %v2180_v61, 30  ;;  %vm2071_vm9 = vc.u32 %v5364_v60, %v5360_v23  ;;  %v2070_v62 = vadd.s32 %v5360_v23, %v5364_v60  ;;  %v2204_v45 = vsub.s32 4, %v2180_v61 }
 0x3ee   :  { %v2073_v31 = vsel %vm2071_vm9, %v2072_v28, %v5361_v24  ;;  %vm2106_vm9 = vweird.f32 %v5302_v43 }
 0x3ef   :  { %v2182_v29 = vsub.s32 %v2178_v7, %v2181_v27  ;;  %v2074_v32 = vadd.s32 %v2073_v31, %v2069_v6  ;;  %v2205_v11 = vsel %vm2120_vm12, %v2204_v45, %v2180_v61 }
 0x3f0   :  { %v2207_v24 = vsel %vm2119_vm13, 0, %v2205_v11 }
 0x3f1   :  { %v2184_v37 = vsub.s32 0, %v2182_v29  ;;  %v2075_v50 = vadd.s32 536870912, %v2074_v32  ;;  %v2211_v28 = vadd.s32 3, %v2207_v24 }
 0x3f3   :  { %v4216_v34 = vmin.u32 %v2184_v37, %v2182_v29  ;;  %v2076_v17 = vshrl.u32 %v2075_v50, 30  ;;  %v2212_v31 = vand.u32 3, %v2211_v28  ;;  %v4220_v37 = vld [vmem:[%s5630_s1 + $0x38] sm:$0x3] }
 0x3f5   :  { %v2186_v36 = vclz %v4216_v34  ;;  %v2077_v38 = vshll.u32 %v2076_v17, 30  ;;  %v2100_v27 = vsub.s32 4, %v2076_v17  ;;  %vm2217_vm2 = vcmp.eq.s32.totalorder %v2212_v31, 2 }
 0x3f6   :  { %vm2214_vm3 = vcmp.eq.s32.totalorder %v2212_v31, 0  ;;  %vm2213_vm4 = vcmp.lt.s32.totalorder %v2212_v31, 2 }
 0x3f7   :  { %v4217_v39 = vadd.s32 4294967294, %v2186_v36  ;;  %v2078_v54 = vsub.s32 %v2074_v32, %v2077_v38  ;;  %v2242_v38 = vsel %vm31_vm1, %v4220_v37, 0 }
 0x3f9   :  { %vm4218_vm10 = vcmp.lt.s32.totalorder %v4217_v39, 0  ;;  %v2080_v49 = vsub.s32 0, %v2078_v54 }
 0x3fa   :  { %v2189_v47 = vsel %vm4218_vm10, 0, %v4217_v39 }
 0x3fb   :  { %v2190_v52 = vsub.s32 32, %v2189_v47  ;;  %v2194_v56 = vsub.s32 4294967266, %v2189_v47  ;;  %v4212_v58 = vmin.u32 %v2080_v49, %v2078_v54  ;;  %v2191_v59 = vshll.u32 %v2182_v29, %v2189_v47 }
 0x3fc   :  { %v2101_v29 = vsel %vm2016_vm14, %v2100_v27, %v2076_v17  ;;  %v2324_v49 = vand.u32 4294901760, %v2242_v38  ;;  %v2231_v27 = vpop.permute.xlu1 %2230 }
 0x3fd   :  { %v2192_v57 = vshrl.u32 %v2174_v10, %v2190_v52  ;;  %v2195_v63 = vadd.s32 127, %v2194_v56  ;;  %v2082_v1 = vclz %v4212_v58  ;;  %v2103_v34 = vsel %vm5378_vm15, 0, %v2101_v29 }
 0x3ff   :  { %v2193_v3 = vor.u32 %v2192_v57, %v2191_v59  ;;  %v2196_v15 = vshll.u32 %v2195_v63, 23  ;;  %v4213_v20 = vadd.s32 4294967294, %v2082_v1  ;;  %v2325_v57 = vsub.f32 %v2242_v38, %v2324_v49 }
 0x401   :  { %v2197_v21 = vor.u32 4788187, %v2196_v15  ;;  %vm4214_vm11 = vcmp.lt.s32.totalorder %v4213_v20, 0  ;;  %v2200_v2 = vcvt.s32.f32 %v2193_v3 }
 0x402   :  { %v2085_v0 = vsel %vm4214_vm11, 0, %v4213_v20 }
 0x403   :  { %v2198_v22 = vand.u32 2147483647, %v2197_v21  ;;  %v2086_v9 = vsub.s32 32, %v2085_v0  ;;  %v2090_v46 = vsub.s32 4294967266, %v2085_v0  ;;  %v2087_v7 = vshll.u32 %v2078_v54, %v2085_v0 }
 0x404   :  { %v2107_v54 = vadd.s32 3, %v2103_v34 }
 0x405   :  { %v2201_v40 = vmul.f32 %v2200_v2, %v2198_v22  ;;  %v2088_v13 = vshrl.u32 %v2070_v62, %v2086_v9  ;;  %v2091_v5 = vadd.s32 127, %v2090_v46  ;;  %v2326_v22 = vand.u32 4294901760, %v2325_v57 }
 0x406   :  { %v2108_v58 = vand.u32 3, %v2107_v54 }
 0x407   :  { %v2202_v4 = vxor.u32 2147483648, %v2201_v40  ;;  %v2089_v48 = vor.u32 %v2088_v13, %v2087_v7  ;;  %v2092_v53 = vshll.u32 %v2091_v5, 23  ;;  %v2327_v46 = vsub.f32 %v2325_v57, %v2326_v22 }
 0x408   :  { %vm2113_vm6 = vcmp.eq.s32.totalorder %v2108_v58, 2  ;;  %vm2110_vm7 = vcmp.eq.s32.totalorder %v2108_v58, 0  ;;  %vm2109_vm8 = vcmp.lt.s32.totalorder %v2108_v58, 2 }
 0x409   :  { %v2203_v55 = vsel %vm2120_vm12, %v2202_v4, %v2201_v40  ;;  %v2093_v23 = vor.u32 4788187, %v2092_v53  ;;  %v2096_v60 = vcvt.s32.f32 %v2089_v48  ;;  %v2328_v13 = vand.u32 4294901760, %v2327_v46 }
 0x40a   :  { %v2206_v19 = vsel %vm2119_vm13, %v5300_v35, %v2203_v55 }
 0x40b   :  { %4914 = vcosq.f32 %v2206_v19  ;;  %v2094_v25 = vand.u32 2147483647, %v2093_v23 }
 0x40c   :  { %4916 = vsinq.f32 %v2206_v19  ;;  %v4231_v19 = vld [vmem:[%s5630_s1 + $0x40] sm:$0xff] }
 0x40d   :  { %v2097_v51 = vmul.f32 %v2096_v60, %v2094_v25  ;;  %v2974_v23 = vsel %vm31_vm1, %v4231_v19, 0 }
 0x40e   :  { %v5404_v24 = vand.u32 4294901760, %v2974_v23 }
 0x40f   :  { %v2098_v6 = vxor.u32 2147483648, %v2097_v51 }
 0x411   :  { %v2099_v61 = vsel %vm2016_vm14, %v2098_v6, %v2097_v51 }
 0x412   :  { %v2102_v32 = vsel %vm5378_vm15, %v5302_v43, %v2099_v61 }
 0x413   :  { %4918 = vcosq.f32 %v2102_v32 }
 0x414   :  { %4920 = vsinq.f32 %v2102_v32 }
 0x415   :  { %v4915_v50 = vpop.eup %4914 }
 0x416   :  { %v4917_v44 = vpop.eup %4916  ;;  %v2218_v36 = vxor.u32 2147483648, %v4915_v50 }
 0x417   :  { %v2215_v17 = vxor.u32 2147483648, %v4917_v44 }
 0x418   :  { %v2219_v39 = vsel %vm2217_vm2, %v2218_v36, %v4917_v44 }
 0x419   :  { %v2216_v47 = vsel %vm2214_vm3, %v4915_v50, %v2215_v17 }
 0x41a   :  { %v2220_v10 = vsel %vm2213_vm4, %v2216_v47, %v2219_v39 }
 0x41b   :  { %v2221_v52 = vsel %vm2210_vm5, nan, %v2220_v10 }
 0x41c   :  { %v2245_v56 = vsel %vm38_vm0, %v2221_v52, 0 }
 0x41d   :  { %v2251_v59 = vand.u32 4294901760, %v2245_v56  ;;  %v4919_v63 = vpop.eup %4918 }
 0x41e   :  { %v4921_v1 = vpop.eup %4920  ;;  %v2114_v3 = vxor.u32 2147483648, %v4919_v63 }
 0x41f   :  { %v2343_v15 = vsub.f32 %v2245_v56, %v2251_v59  ;;  %v2111_v20 = vxor.u32 2147483648, %v4921_v1 }
 0x420   :  { %v2115_v21 = vsel %vm2113_vm6, %v2114_v3, %v4921_v1 }
 0x421   :  { %v2112_v2 = vsel %vm2110_vm7, %v4919_v63, %v2111_v20  ;;  %v2344_v0 = vand.u32 4294901760, %v2343_v15 }
 0x422   :  { %v2116_v35 = vsel %vm2109_vm8, %v2112_v2, %v2115_v21 }
 0x423   :  { %v2117_v62 = vsel %vm2106_vm9, nan, %v2116_v35  ;;  %v2345_v7 = vsub.f32 %v2343_v15, %v2344_v0 }
 0x424   :  { %v2248_v9 = vand.u32 4294901760, %v2117_v62 }
 0x425   :  { %v2346_v48 = vand.u32 4294901760, %v2345_v7 }
 0x426   :  { %v4708_v40 = vpack.c.bf16 %v2251_v59, %v2248_v9  ;;  %v2336_v45 = vsub.f32 %v2117_v62, %v2248_v9 }
 0x428   :  { %4709 = vmatprep.subr.bf16.mxu1 %v4708_v40  ;;  %v2337_v5 = vand.u32 4294901760, %v2336_v45  ;;  %v4716_v43 = vpack.c.bf16 %v2343_v15, %v2336_v45 }
 0x429   :  { %4711 = vmatpush3.bf16.msra.mxu1 %v4708_v40 }
 0x42a   :  { %v2338_v4 = vsub.f32 %v2336_v45, %v2337_v5  ;;  %v4724_v11 = vpack.c.bf16 %v2344_v0, %v2337_v5 }
 0x42c   :  { %4515 = vmatmul.mubr.f32.vlgmr.msra.gmra.mrb[2].mxu1 %v2328_v13  ;;  %v2339_v53 = vand.u32 4294901760, %v2338_v4 }
 0x42d   :  { %4521 = vmatprep.mubr.f32.mxu1 %v5291_v30 }
 0x42e   :  { %v4712_v55 = vpack.c.bf16 %v2346_v48, %v2339_v53 }
 0x430   :  { %4713 = vmatprep.subr.bf16.mxu1 %v4712_v55 }
 0x431   :  { %4715 = vmatpush3.bf16.msra.mxu1 %v4712_v55 }
 0x432   :  { %4717 = vmatprep.subr.bf16.mxu1 %v4716_v43 }
 0x434   :  { %4522 = vmatmul.mubr.f32.vlgmr.msra.gmra.mrb[2].mxu1 %v2324_v49 }
 0x435   :  { %4719 = vmatpush3.bf16.msra.mxu1 %v4716_v43  ;;  %4528 = vmatprep.mubr.f32.mxu1 %v5294_v41  ;;  %v5407_v41 = vsub.f32 %v2974_v23, %v5404_v24 }
 0x436   :  { %4721 = vmatprep.subr.bf16.mxu1 %v4708_v40 }
 0x43c   :  { %4529 = vmatmul.mubr.f32.vlgmr.msra.gmra.mrb[2].mxu1 %v2325_v57 }
 0x43d   :  { %4723 = vmatpush3.bf16.msra.mxu1 %v4708_v40  ;;  %4535 = vmatprep.mubr.f32.mxu1 %v2316_v42  ;;  %v3051_v42 = vand.u32 4294901760, %v5407_v41 }
 0x43e   :  { %4725 = vmatprep.subr.bf16.mxu1 %v4724_v11 }
 0x43f   :  { %v3052_v25 = vsub.f32 %v5407_v41, %v3051_v42 }
 0x441   :  { %v3053_v60 = vand.u32 4294901760, %v3052_v25 }
 0x443   :  { %4556 = vmatprep.mubr.f32.mxu0 %v3053_v60 }
 0x444   :  { %4536 = vmatmul.mubr.f32.vlgmr.msra.gmra.mrb[2].mxu1 %v2326_v22 }
 0x445   :  { %4727 = vmatpush3.bf16.msra.mxu1 %v4724_v11  ;;  %4542 = vmatprep.mubr.f32.mxu1 %v5291_v30 }
 0x446   :  { %4729 = vmatprep.subr.bf16.mxu1 %v4708_v40 }
 0x44c   :  { %4543 = vmatmul.mubr.f32.vlgmr.msra.gmra.mrb[2].mxu1 %v2324_v49 }
 0x44d   :  { %4731 = vmatpush3.bf16.msra.mxu1 %v4708_v40  ;;  %4549 = vmatprep.mubr.f32.mxu1 %v5291_v30  ;;  %v2236_v30 = vpop.permute.xlu0 %2235 }
 0x454   :  { %4550 = vmatmul.mubr.f32.vlgmr.msra.gmra.mrb[2].mxu1 %v2324_v49 }
 0x527   :  { %v4551_v51 = vpop.f32.mrb[2].mxu1 }
 0x528   :  { %v5413_v28 = vadd.f32 %v4551_v51, %v2236_v30  ;;  %v2739_v6 = vpop.f32.mrb[3].mxu1 }
 0x529   :  { %v5415_v33 = vadd.f32 %v2739_v6, %v2231_v27 }
 0x52a   :  { %v2853_v61 = vand.u32 2147483647, %v5413_v28  ;;  %v2856_v29 = vand.u32 2139095040, %v5413_v28 }
 0x52b   :  { %v2752_v31 = vand.u32 2139095040, %v5415_v33  ;;  %v2749_v50 = vand.u32 2147483647, %v5415_v33 }
 0x52c   :  { %v2857_v32 = vshrl.u32 %v2856_v29, 23  ;;  %v2860_v37 = vand.u32 8388607, %v2853_v61 }
 0x52d   :  { %v2753_v34 = vshrl.u32 %v2752_v31, 23  ;;  %v2756_v39 = vand.u32 8388607, %v2749_v50 }
 0x52e   :  { %v4227_v44 = vadd.s32 4294967169, %v2857_v32  ;;  %v2861_v17 = vor.u32 8388608, %v2860_v37 }
 0x52f   :  { %v4223_v36 = vadd.s32 4294967169, %v2753_v34  ;;  %v2757_v58 = vor.u32 8388608, %v2756_v39 }
 0x530   :  { %v2863_v38 = vadd.s32 1, %v4227_v44  ;;  %v5425_v56 = vshll.u32 %v2861_v17, 8 }
 0x531   :  { %v2759_v54 = vadd.s32 1, %v4223_v36 }
 0x532   :  { %vm2864_vm10 = vcmp.gt.s32.totalorder %v2863_v38, 0 }
 0x533   :  { %v2865_v47 = vsel %vm2864_vm10, %v2863_v38, 0  ;;  %vm2760_vm11 = vcmp.gt.s32.totalorder %v2759_v54, 0  ;;  %vm2855_vm10 = vcmp.lt.s32.totalorder %v5413_v28, 0 }
 0x534   :  { %v2866_v49 = vshrl.u32 %v2865_v47, 5  ;;  %v2867_v10 = vand.u32 31, %v2865_v47  ;;  %v2761_v52 = vsel %vm2760_vm11, %v2759_v54, 0  ;;  %vm2854_vm11 = vcmp.le.f32.partialorder %v2853_v61, 0.7853982 }
 0x535   :  { %v5428_v63 = vshrl.u32 %v2761_v52, 5  ;;  %v2763_v1 = vand.u32 31, %v2761_v52 }
 0x536   :  { %v2868_v59 = vsub.s32 32, %v2867_v10  ;;  %v2870_v57 = vshll.u32 %v4967_v8, %v2867_v10  ;;  %v2873_v3 = vshll.u32 %v4968_v12, %v2867_v10  ;;  %v2876_v15 = vshll.u32 %v4969_v14, %v2867_v10 }
 0x537   :  { %v2879_v20 = vshll.u32 %v4970_v16, %v2867_v10  ;;  %v2882_v21 = vshll.u32 %v4971_v18, %v2867_v10  ;;  %vm2885_vm12 = vcmp.lt.s32.totalorder %v2866_v49, 1  ;;  %vm2886_vm13 = vcmp.lt.s32.totalorder %v2866_v49, 2 }
 0x538   :  { %v2871_v22 = vshrl.u32 %v4968_v12, %v2868_v59  ;;  %v2874_v2 = vshrl.u32 %v4969_v14, %v2868_v59  ;;  %v2877_v35 = vshrl.u32 %v4970_v16, %v2868_v59  ;;  %v2869_v0 = vshrl.u32 %v4967_v8, %v2868_v59 }
 0x539   :  { %v2880_v62 = vshrl.u32 %v4971_v18, %v2868_v59  ;;  %v2883_v9 = vshrl.u32 %v4972_v26, %v2868_v59  ;;  %v2764_v7 = vsub.s32 32, %v2763_v1  ;;  %vm2887_vm14 = vcmp.lt.s32.totalorder %v2866_v49, 3 }
 0x53a   :  { %v2872_v46 = vor.u32 %v2871_v22, %v2870_v57  ;;  %v2875_v40 = vor.u32 %v2874_v2, %v2873_v3  ;;  %v2878_v45 = vor.u32 %v2877_v35, %v2876_v15  ;;  %vm2888_vm15 = vcmp.lt.s32.totalorder %v2866_v49, 4 }
 0x53b   :  { %v2881_v13 = vor.u32 %v2880_v62, %v2879_v20  ;;  %v2884_v5 = vor.u32 %v2883_v9, %v2882_v21  ;;  %v2766_v23 = vshll.u32 %v4967_v8, %v2763_v1  ;;  %v2767_v30 = vshrl.u32 %v4968_v12, %v2764_v7 }
 0x53c   :  { %v2889_v4 = vsel %vm2885_vm12, %v2869_v0, %v2872_v46  ;;  %v2890_v48 = vsel %vm2888_vm15, %v2878_v45, 2102212464  ;;  %v2893_v53 = vsel %vm2885_vm12, %v2872_v46, %v2875_v40  ;;  %v2897_v55 = vsel %vm2885_vm12, %v2875_v40, %v2878_v45 }
 0x53d   :  { %v2891_v43 = vsel %vm2887_vm14, %v2875_v40, %v2890_v48  ;;  %v2894_v11 = vsel %vm2888_vm15, %v2881_v13, 920167782  ;;  %v2898_v19 = vsel %vm2888_vm15, %v2884_v5, 1326507024  ;;  %v2769_v51 = vshll.u32 %v4968_v12, %v2763_v1 }
 0x53e   :  { %v2895_v25 = vsel %vm2887_vm14, %v2878_v45, %v2894_v11  ;;  %v2899_v60 = vsel %vm2887_vm14, %v2881_v13, %v2898_v19  ;;  %v2892_v27 = vsel %vm2886_vm13, %v2889_v4, %v2891_v43  ;;  %v2770_v31 = vshrl.u32 %v4969_v14, %v2764_v7 }
 0x53f   :  { %v2896_v6 = vsel %vm2886_vm13, %v2893_v53, %v2895_v25  ;;  %v2900_v29 = vsel %vm2886_vm13, %v2897_v55, %v2899_v60  ;;  %v2768_v36 = vor.u32 %v2767_v30, %v2766_v23  ;;  %v2772_v17 = vshll.u32 %v4969_v14, %v2763_v1 }
 0x540   :  { %v5451_v32 = vmul.u32.u64.low %v5425_v56, %v2900_v29  ;;  %v5452_v37 = vmul.u32.u64.high %v5425_v56, %v2900_v29, %v5451_v32  ;;  %v5455_v34 = vmul.u32.u64.low %v5425_v56, %v2896_v6  ;;  %v5456_v44 = vmul.u32.u64.high %v5425_v56, %v2896_v6, %v5455_v34 }
 0x541   :  { %v2771_v38 = vor.u32 %v2770_v31, %v2769_v51  ;;  %v2773_v39 = vshrl.u32 %v4970_v16, %v2764_v7  ;;  %v2775_v54 = vshll.u32 %v4970_v16, %v2763_v1  ;;  %v2776_v47 = vshrl.u32 %v4971_v18, %v2764_v7 }
 0x542   :  { %v2779_v49 = vshrl.u32 %v4972_v26, %v2764_v7  ;;  %v2797_v10 = vshll.u32 %v2757_v58, 8  ;;  %v2908_v52 = vmul.u32 %v5425_v56, %v2892_v27  ;;  %v2765_v59 = vshrl.u32 %v4967_v8, %v2764_v7 }
 0x543   :  { %v2774_v57 = vor.u32 %v2773_v39, %v2772_v17  ;;  %v2778_v3 = vshll.u32 %v4971_v18, %v2763_v1  ;;  %vm2910_vm2 = vc.u32 %v5452_v37, %v5455_v34  ;;  %v2911_v15 = vadd.s32 1, %v5456_v44 }
 0x544   :  { %v2777_v20 = vor.u32 %v2776_v47, %v2775_v54  ;;  %vm2781_vm3 = vcmp.lt.s32.totalorder %v5428_v63, 1  ;;  %vm2783_vm4 = vcmp.lt.s32.totalorder %v5428_v63, 3  ;;  %vm2784_vm5 = vcmp.lt.s32.totalorder %v5428_v63, 4 }
 0x545   :  { %v2780_v21 = vor.u32 %v2779_v49, %v2778_v3  ;;  %v2789_v58 = vsel %vm2781_vm3, %v2768_v36, %v2771_v38  ;;  %v2912_v56 = vsel %vm2910_vm2, %v2911_v15, %v5456_v44  ;;  %v2786_v22 = vsel %vm2784_vm5, %v2774_v57, 2102212464 }
 0x546   :  { %v2790_v2 = vsel %vm2784_vm5, %v2777_v20, 920167782  ;;  %v2793_v35 = vsel %vm2781_vm3, %v2771_v38, %v2774_v57  ;;  %v2913_v0 = vadd.s32 %v2912_v56, %v2908_v52  ;;  %vm2782_vm6 = vcmp.lt.s32.totalorder %v5428_v63, 2 }
 0x547   :  { %v2791_v1 = vsel %vm2783_vm4, %v2774_v57, %v2790_v2  ;;  %v2794_v62 = vsel %vm2784_vm5, %v2780_v21, 1326507024  ;;  %v2785_v9 = vsel %vm2781_vm3, %v2765_v59, %v2768_v36  ;;  %v2787_v46 = vsel %vm2783_vm4, %v2771_v38, %v2786_v22 }
 0x548   :  { %v2792_v40 = vsel %vm2782_vm6, %v2789_v58, %v2791_v1  ;;  %v2795_v45 = vsel %vm2783_vm4, %v2777_v20, %v2794_v62  ;;  %v2914_v7 = vadd.s32 536870912, %v2913_v0  ;;  %v2788_v43 = vsel %vm2782_vm6, %v2785_v9, %v2787_v46 }
 0x549   :  { %v2796_v13 = vsel %vm2782_vm6, %v2793_v35, %v2795_v45  ;;  %v5473_v5 = vmul.u32.u64.low %v2797_v10, %v2792_v40  ;;  %v5474_v4 = vmul.u32.u64.high %v2797_v10, %v2792_v40, %v5473_v5  ;;  %v2804_v63 = vmul.u32 %v2797_v10, %v2788_v43 }
 0x54a   :  { %v5476_v48 = vmul.u32.u64.low %v2797_v10, %v2796_v13  ;;  %v5477_v53 = vmul.u32.u64.high %v2797_v10, %v2796_v13, %v5476_v48  ;;  %v2915_v55 = vshrl.u32 %v2914_v7, 30  ;;  %v2909_v17 = vadd.s32 %v5455_v34, %v5452_v37 }
 0x54b   :  { %v2807_v19 = vadd.s32 1, %v5474_v4  ;;  %vm2751_vm12 = vcmp.lt.s32.totalorder %v5415_v33, 0  ;;  %vm5491_vm13 = vcmp.le.f32.partialorder %v2749_v50, 0.7853982  ;;  %vm2945_vm3 = vweird.f32 %v5413_v28 }
 0x54c   :  { %v2916_v11 = vshll.u32 %v2915_v55, 30  ;;  %vm2806_vm7 = vc.u32 %v5477_v53, %v5473_v5  ;;  %v2805_v22 = vadd.s32 %v5473_v5, %v5477_v53  ;;  %v2939_v34 = vsub.s32 4, %v2915_v55 }
 0x54d   :  { %v2808_v25 = vsel %vm2806_vm7, %v2807_v19, %v5474_v4  ;;  %vm2841_vm7 = vweird.f32 %v5415_v33 }
 0x54e   :  { %v2917_v23 = vsub.s32 %v2913_v0, %v2916_v11  ;;  %v2809_v60 = vadd.s32 %v2808_v25, %v2804_v63  ;;  %v2940_v7 = vsel %vm2855_vm10, %v2939_v34, %v2915_v55 }
 0x54f   :  { %v2942_v4 = vsel %vm2854_vm11, 0, %v2940_v7 }
 0x550   :  { %v2919_v30 = vsub.s32 0, %v2917_v23  ;;  %v2810_v51 = vadd.s32 536870912, %v2809_v60  ;;  %v2946_v19 = vadd.s32 3, %v2942_v4  ;;  %v2966_v4 = vpop.permute.xlu1 %2965 }
 0x552   :  { %v4228_v27 = vmin.u32 %v2919_v30, %v2917_v23  ;;  %v2811_v6 = vshrl.u32 %v2810_v51, 30  ;;  %v2947_v25 = vand.u32 3, %v2946_v19  ;;  %v4232_v30 = vld [vmem:[%s5630_s1 + $0x48] sm:$0x3] }
 0x554   :  { %v2921_v29 = vclz %v4228_v27  ;;  %v2812_v31 = vshll.u32 %v2811_v6, 30  ;;  %v2835_v11 = vsub.s32 4, %v2811_v6  ;;  %vm2952_vm14 = vcmp.eq.s32.totalorder %v2947_v25, 2 }
 0x555   :  { %vm2949_vm15 = vcmp.eq.s32.totalorder %v2947_v25, 0  ;;  %vm2948_vm2 = vcmp.lt.s32.totalorder %v2947_v25, 2 }
 0x556   :  { %v4229_v32 = vadd.s32 4294967294, %v2921_v29  ;;  %v2813_v44 = vsub.s32 %v2809_v60, %v2812_v31  ;;  %v2977_v31 = vsel %vm31_vm1, %v4232_v30, 0 }
 0x558   :  { %vm4230_vm8 = vcmp.lt.s32.totalorder %v4229_v32, 0  ;;  %v2815_v38 = vsub.s32 0, %v2813_v44 }
 0x559   :  { %v2924_v36 = vsel %vm4230_vm8, 0, %v4229_v32  ;;  %vm4974_vm8 = vmmov 0  }
 0x55a   :  { %v2925_v39 = vsub.s32 32, %v2924_v36  ;;  %v2929_v54 = vsub.s32 4294967266, %v2924_v36  ;;  %v4224_v47 = vmin.u32 %v2815_v38, %v2813_v44  ;;  %v2926_v49 = vshll.u32 %v2917_v23, %v2924_v36 }
 0x55b   :  { %v2836_v23 = vsel %vm2751_vm12, %v2835_v11, %v2811_v6  ;;  %v3059_v38 = vand.u32 4294901760, %v2977_v31 }
 0x55c   :  { %v2927_v10 = vshrl.u32 %v2909_v17, %v2925_v39  ;;  %v2930_v52 = vadd.s32 127, %v2929_v54  ;;  %v2817_v59 = vclz %v4224_v47  ;;  %v2838_v27 = vsel %vm5491_vm13, 0, %v2836_v23 }
 0x55e   :  { %v2928_v57 = vor.u32 %v2927_v10, %v2926_v49  ;;  %v2931_v3 = vshll.u32 %v2930_v52, 23  ;;  %v4225_v15 = vadd.s32 4294967294, %v2817_v59  ;;  %v3060_v10 = vsub.f32 %v2977_v31, %v3059_v38 }
 0x560   :  { %v2932_v20 = vor.u32 4788187, %v2931_v3  ;;  %vm4226_vm9 = vcmp.lt.s32.totalorder %v4225_v15, 0  ;;  %v2935_v58 = vcvt.s32.f32 %v2928_v57 }
 0x561   :  { %v2820_v56 = vsel %vm4226_vm9, 0, %v4225_v15 }
 0x562   :  { %v2933_v21 = vand.u32 2147483647, %v2932_v20  ;;  %v2821_v2 = vsub.s32 32, %v2820_v56  ;;  %v2825_v35 = vsub.s32 4294967266, %v2820_v56  ;;  %v2822_v0 = vshll.u32 %v2813_v44, %v2820_v56 }
 0x563   :  { %v2842_v44 = vadd.s32 3, %v2838_v27 }
 0x564   :  { %v2936_v37 = vmul.f32 %v2935_v58, %v2933_v21  ;;  %v2823_v1 = vshrl.u32 %v2805_v22, %v2821_v2  ;;  %v2826_v62 = vadd.s32 127, %v2825_v35  ;;  %v3061_v21 = vand.u32 4294901760, %v3060_v10 }
 0x565   :  { %v2843_v47 = vand.u32 3, %v2842_v44 }
 0x566   :  { %v2937_v9 = vxor.u32 2147483648, %v2936_v37  ;;  %v2824_v46 = vor.u32 %v2823_v1, %v2822_v0  ;;  %v2827_v40 = vshll.u32 %v2826_v62, 23  ;;  %v3062_v35 = vsub.f32 %v3060_v10, %v3061_v21 }
 0x567   :  { %vm2848_vm4 = vcmp.eq.s32.totalorder %v2843_v47, 2  ;;  %vm2845_vm5 = vcmp.eq.s32.totalorder %v2843_v47, 0  ;;  %vm2844_vm6 = vcmp.lt.s32.totalorder %v2843_v47, 2 }
 0x568   :  { %v2938_v45 = vsel %vm2855_vm10, %v2937_v9, %v2936_v37  ;;  %v2828_v5 = vor.u32 4788187, %v2827_v40  ;;  %v2831_v53 = vcvt.s32.f32 %v2824_v46  ;;  %v3063_v1 = vand.u32 4294901760, %v3062_v35 }
 0x569   :  { %v2941_v13 = vsel %vm2854_vm11, %v5413_v28, %v2938_v45 }
 0x56a   :  { %4922 = vcosq.f32 %v2941_v13  ;;  %v2829_v48 = vand.u32 2147483647, %v2828_v5  ;;  %v4975_v5 = vmov 0.0  }
 0x56b   :  { %4924 = vsinq.f32 %v2941_v13  ;;  %v4973_v13 = vmov 0.0|0.0   ;;  %4598 = vmatprep.mubr.msk.f32.mxu1 %vm4974_vm8, %v4975_v5 }
 0x56c   :  { %v2832_v43 = vmul.f32 %v2831_v53, %v2829_v48  ;;  %4756 = vmatprep.subr.bf16.mxu1 %v4973_v13 }
 0x56e   :  { %v2833_v63 = vxor.u32 2147483648, %v2832_v43 }
 0x570   :  { %v2834_v55 = vsel %vm2751_vm12, %v2833_v63, %v2832_v43 }
 0x571   :  { %v2837_v60 = vsel %vm5491_vm13, %v5415_v33, %v2834_v55 }
 0x572   :  { %4926 = vcosq.f32 %v2837_v60 }
 0x573   :  { %4928 = vsinq.f32 %v2837_v60 }
 0x574   :  { %v4923_v51 = vpop.eup %4922 }
 0x575   :  { %v4925_v50 = vpop.eup %4924  ;;  %v2953_v29 = vxor.u32 2147483648, %v4923_v51 }
 0x576   :  { %v2950_v6 = vxor.u32 2147483648, %v4925_v50 }
 0x577   :  { %v2954_v32 = vsel %vm2952_vm14, %v2953_v29, %v4925_v50 }
 0x578   :  { %v2951_v36 = vsel %vm2949_vm15, %v4923_v51, %v2950_v6 }
 0x579   :  { %v2955_v17 = vsel %vm2948_vm2, %v2951_v36, %v2954_v32 }
 0x57a   :  { %v2956_v39 = vsel %vm2945_vm3, nan, %v2955_v17 }
 0x57b   :  { %v2980_v54 = vsel %vm38_vm0, %v2956_v39, 0 }
 0x57c   :  { %v2986_v49 = vand.u32 4294901760, %v2980_v54  ;;  %v4927_v52 = vpop.eup %4926 }
 0x57d   :  { %v4929_v59 = vpop.eup %4928  ;;  %v2849_v57 = vxor.u32 2147483648, %v4927_v52 }
 0x57e   :  { %v3078_v3 = vsub.f32 %v2980_v54, %v2986_v49  ;;  %v2846_v15 = vxor.u32 2147483648, %v4929_v59 }
 0x57f   :  { %v2850_v20 = vsel %vm2848_vm4, %v2849_v57, %v4929_v59 }
 0x580   :  { %v2847_v58 = vsel %vm2845_vm5, %v4927_v52, %v2846_v15  ;;  %v3079_v56 = vand.u32 4294901760, %v3078_v3 }
 0x581   :  { %v2851_v28 = vsel %vm2844_vm6, %v2847_v58, %v2850_v20 }
 0x582   :  { %v2852_v22 = vsel %vm2841_vm7, nan, %v2851_v28  ;;  %v3080_v0 = vsub.f32 %v3078_v3, %v3079_v56 }
 0x583   :  { %v2983_v2 = vand.u32 4294901760, %v2852_v22 }
 0x584   :  { %v3081_v46 = vand.u32 4294901760, %v3080_v0 }
 0x585   :  { %v4732_v37 = vpack.c.bf16 %v2986_v49, %v2983_v2  ;;  %v3071_v34 = vsub.f32 %v2852_v22, %v2983_v2 }
 0x587   :  { %4733 = vmatprep.subr.bf16.mxu0 %v4732_v37  ;;  %v3072_v62 = vand.u32 4294901760, %v3071_v34  ;;  %v4740_v33 = vpack.c.bf16 %v3078_v3, %v3071_v34 }
 0x588   :  { %4735 = vmatpush3.bf16.msra.mxu0 %v4732_v37 }
 0x589   :  { %v3073_v9 = vsub.f32 %v3071_v34, %v3072_v62  ;;  %v4748_v7 = vpack.c.bf16 %v3079_v56, %v3072_v62 }
 0x58b   :  { %4557 = vmatmul.mubr.f32.vlgmr.msra.gmra.mrb[4].mxu0 %v3063_v1  ;;  %v3074_v40 = vand.u32 4294901760, %v3073_v9 }
 0x58c   :  { %4563 = vmatprep.mubr.f32.mxu0 %v5404_v24 }
 0x58d   :  { %v4736_v45 = vpack.c.bf16 %v3081_v46, %v3074_v40 }
 0x58f   :  { %4737 = vmatprep.subr.bf16.mxu0 %v4736_v45 }
 0x590   :  { %4739 = vmatpush3.bf16.msra.mxu0 %v4736_v45 }
 0x591   :  { %4741 = vmatprep.subr.bf16.mxu0 %v4740_v33 }
 0x593   :  { %4564 = vmatmul.mubr.f32.vlgmr.msra.gmra.mrb[4].mxu0 %v3059_v38 }
 0x594   :  { %4743 = vmatpush3.bf16.msra.mxu0 %v4740_v33  ;;  %4570 = vmatprep.mubr.f32.mxu0 %v5407_v41  ;;  %v2971_v41 = vpop.permute.xlu0 %2970 }
 0x595   :  { %4745 = vmatprep.subr.bf16.mxu0 %v4732_v37 }
 0x59b   :  { %4571 = vmatmul.mubr.f32.vlgmr.msra.gmra.mrb[4].mxu0 %v3060_v10 }
 0x59c   :  { %4747 = vmatpush3.bf16.msra.mxu0 %v4732_v37  ;;  %4577 = vmatprep.mubr.f32.mxu0 %v3051_v42 }
 0x59d   :  { %4749 = vmatprep.subr.bf16.mxu0 %v4748_v7 }
 0x5a3   :  { %4578 = vmatmul.mubr.f32.vlgmr.msra.gmra.mrb[4].mxu0 %v3061_v21 }
 0x5a4   :  { %4751 = vmatpush3.bf16.msra.mxu0 %v4748_v7  ;;  %4584 = vmatprep.mubr.f32.mxu0 %v5404_v24 }
 0x5a5   :  { %4753 = vmatprep.subr.bf16.mxu0 %v4732_v37 }
 0x5ab   :  { %4585 = vmatmul.mubr.f32.vlgmr.msra.gmra.mrb[4].mxu0 %v3059_v38 }
 0x5ac   :  { %4755 = vmatpush3.bf16.msra.mxu0 %v4732_v37  ;;  %4591 = vmatprep.mubr.f32.mxu0 %v5404_v24 }
 0x5b3   :  { %4592 = vmatmul.mubr.f32.vlgmr.msra.gmra.mrb[4].mxu0 %v3059_v38 }
 0x686   :  { %v4593_v42 = vpop.f32.mrb[4].mxu0 }
 0x687   :  { %v5516_v48 = vadd.f32 %v4593_v42, %v2971_v41  ;;  %v3474_v53 = vpop.f32.mrb[5].mxu0 }
 0x688   :  { %v5518_v43 = vadd.f32 %v3474_v53, %v2966_v4 }
 0x689   :  { %v3588_v11 = vand.u32 2147483647, %v5516_v48  ;;  %v3591_v24 = vand.u32 2139095040, %v5516_v48 }
 0x68a   :  { %v3487_v19 = vand.u32 2139095040, %v5518_v43  ;;  %v3484_v55 = vand.u32 2147483647, %v5518_v43 }
 0x68b   :  { %v3592_v63 = vshrl.u32 %v3591_v24, 23  ;;  %v3595_v61 = vand.u32 8388607, %v3588_v11 }
 0x68c   :  { %v3488_v23 = vshrl.u32 %v3487_v19, 23  ;;  %v3491_v27 = vand.u32 8388607, %v3484_v55 }
 0x68d   :  { %v4239_v25 = vadd.s32 4294967169, %v3592_v63  ;;  %v3596_v51 = vor.u32 8388608, %v3595_v61 }
 0x68e   :  { %v4235_v60 = vadd.s32 4294967169, %v3488_v23  ;;  %v3492_v36 = vor.u32 8388608, %v3491_v27 }
 0x68f   :  { %v3598_v30 = vadd.s32 1, %v4239_v25  ;;  %v5528_v44 = vshll.u32 %v3596_v51, 8 }
 0x690   :  { %v3494_v50 = vadd.s32 1, %v4235_v60 }
 0x691   :  { %vm3599_vm9 = vcmp.gt.s32.totalorder %v3598_v30, 0 }
 0x692   :  { %v3600_v29 = vsel %vm3599_vm9, %v3598_v30, 0  ;;  %vm3495_vm10 = vcmp.gt.s32.totalorder %v3494_v50, 0 }
 0x693   :  { %v3601_v31 = vshrl.u32 %v3600_v29, 5  ;;  %v3602_v6 = vand.u32 31, %v3600_v29  ;;  %v3496_v32 = vsel %vm3495_vm10, %v3494_v50, 0  ;;  %v3532_v29 = vshll.u32 %v3492_v36, 8 }
 0x694   :  { %v5531_v39 = vshrl.u32 %v3496_v32, 5  ;;  %v3498_v54 = vand.u32 31, %v3496_v32  ;;  %vm3590_vm10 = vcmp.lt.s32.totalorder %v5516_v48, 0 }
 0x695   :  { %v3603_v38 = vsub.s32 32, %v3602_v6  ;;  %v3605_v17 = vshll.u32 %v4967_v8, %v3602_v6  ;;  %v3608_v47 = vshll.u32 %v4968_v12, %v3602_v6  ;;  %v3611_v49 = vshll.u32 %v4969_v14, %v3602_v6 }
 0x696   :  { %v3614_v10 = vshll.u32 %v4970_v16, %v3602_v6  ;;  %v3617_v52 = vshll.u32 %v4971_v18, %v3602_v6  ;;  %vm3620_vm11 = vcmp.lt.s32.totalorder %v3601_v31, 1  ;;  %vm3621_vm12 = vcmp.lt.s32.totalorder %v3601_v31, 2 }
 0x697   :  { %v3606_v59 = vshrl.u32 %v4968_v12, %v3603_v38  ;;  %v3609_v57 = vshrl.u32 %v4969_v14, %v3603_v38  ;;  %v3612_v3 = vshrl.u32 %v4970_v16, %v3603_v38  ;;  %v3604_v15 = vshrl.u32 %v4967_v8, %v3603_v38 }
 0x698   :  { %v3615_v20 = vshrl.u32 %v4971_v18, %v3603_v38  ;;  %v3618_v21 = vshrl.u32 %v4972_v26, %v3603_v38  ;;  %v3499_v22 = vsub.s32 32, %v3498_v54  ;;  %vm3622_vm13 = vcmp.lt.s32.totalorder %v3601_v31, 3 }
 0x699   :  { %v3607_v58 = vor.u32 %v3606_v59, %v3605_v17  ;;  %v3610_v28 = vor.u32 %v3609_v57, %v3608_v47  ;;  %v3613_v56 = vor.u32 %v3612_v3, %v3611_v49  ;;  %vm3623_vm14 = vcmp.lt.s32.totalorder %v3601_v31, 4 }
 0x69a   :  { %v3616_v2 = vor.u32 %v3615_v20, %v3614_v10  ;;  %v3619_v35 = vor.u32 %v3618_v21, %v3617_v52  ;;  %v3501_v40 = vshll.u32 %v4967_v8, %v3498_v54  ;;  %v3502_v7 = vshrl.u32 %v4968_v12, %v3499_v22 }
 0x69b   :  { %v3624_v37 = vsel %vm3620_vm11, %v3604_v15, %v3607_v58  ;;  %v3625_v34 = vsel %vm3623_vm14, %v3613_v56, 2102212464  ;;  %v3628_v0 = vsel %vm3620_vm11, %v3607_v58, %v3610_v28  ;;  %v3632_v1 = vsel %vm3620_vm11, %v3610_v28, %v3613_v56 }
 0x69c   :  { %v3626_v62 = vsel %vm3622_vm13, %v3610_v28, %v3625_v34  ;;  %v3629_v9 = vsel %vm3623_vm14, %v3616_v2, 920167782  ;;  %v3633_v46 = vsel %vm3623_vm14, %v3619_v35, 1326507024  ;;  %v3504_v41 = vshll.u32 %v4968_v12, %v3498_v54 }
 0x69d   :  { %v3630_v45 = vsel %vm3622_vm13, %v3613_v56, %v3629_v9  ;;  %v3634_v33 = vsel %vm3622_vm13, %v3616_v2, %v3633_v46  ;;  %v3627_v42 = vsel %vm3621_vm12, %v3624_v37, %v3626_v62  ;;  %v3505_v24 = vshrl.u32 %v4969_v14, %v3499_v22 }
 0x69e   :  { %v3631_v4 = vsel %vm3621_vm12, %v3628_v0, %v3630_v45  ;;  %v3635_v53 = vsel %vm3621_vm12, %v3632_v1, %v3634_v33  ;;  %v3503_v25 = vor.u32 %v3502_v7, %v3501_v40  ;;  %v3507_v12 = vshll.u32 %v4969_v14, %v3498_v54 }
 0x69f   :  { %v5554_v19 = vmul.u32.u64.low %v5528_v44, %v3635_v53  ;;  %v5555_v63 = vmul.u32.u64.high %v5528_v44, %v3635_v53, %v5554_v19  ;;  %v5558_v61 = vmul.u32.u64.low %v5528_v44, %v3631_v4  ;;  %v5559_v23 = vmul.u32.u64.high %v5528_v44, %v3631_v4, %v5558_v61 }
 0x6a0   :  { %v3506_v60 = vor.u32 %v3505_v24, %v3504_v41  ;;  %v3508_v30 = vshrl.u32 %v4970_v16, %v3499_v22  ;;  %v3510_v51 = vshll.u32 %v4970_v16, %v3498_v54  ;;  %v3511_v27 = vshrl.u32 %v4971_v18, %v3499_v22 }
 0x6a1   :  { %v3514_v50 = vshrl.u32 %v4972_v26, %v3499_v22  ;;  %v3643_v31 = vmul.u32 %v5528_v44, %v3627_v42  ;;  %v3500_v6 = vshrl.u32 %v4967_v8, %v3499_v22  ;;  %v3513_v38 = vshll.u32 %v4971_v18, %v3498_v54 }
 0x6a2   :  { %v3509_v32 = vor.u32 %v3508_v30, %v3507_v12  ;;  %vm3645_vm15 = vc.u32 %v5555_v63, %v5558_v61  ;;  %v3646_v14 = vadd.s32 1, %v5559_v23  ;;  %v3512_v17 = vor.u32 %v3511_v27, %v3510_v51 }
 0x6a3   :  { %vm3516_vm2 = vcmp.lt.s32.totalorder %v5531_v39, 1  ;;  %v3515_v16 = vor.u32 %v3514_v50, %v3513_v38  ;;  %vm3518_vm3 = vcmp.lt.s32.totalorder %v5531_v39, 3  ;;  %vm3519_vm4 = vcmp.lt.s32.totalorder %v5531_v39, 4 }
 0x6a4   :  { %v3524_v26 = vsel %vm3516_vm2, %v3503_v25, %v3506_v60  ;;  %v3647_v44 = vsel %vm3645_vm15, %v3646_v14, %v5559_v23  ;;  %v3521_v36 = vsel %vm3519_vm4, %v3509_v32, 2102212464  ;;  %v3525_v8 = vsel %vm3519_vm4, %v3512_v17, 920167782 }
 0x6a5   :  { %v3528_v47 = vsel %vm3516_vm2, %v3506_v60, %v3509_v32  ;;  %v3648_v49 = vadd.s32 %v3647_v44, %v3643_v31  ;;  %vm3517_vm5 = vcmp.lt.s32.totalorder %v5531_v39, 2  ;;  %v3526_v18 = vsel %vm3518_vm3, %v3509_v32, %v3525_v8 }
 0x6a6   :  { %v3529_v54 = vsel %vm3519_vm4, %v3515_v16, 1326507024  ;;  %v3520_v10 = vsel %vm3516_vm2, %v3500_v6, %v3503_v25  ;;  %v3522_v52 = vsel %vm3518_vm3, %v3506_v60, %v3521_v36  ;;  %v3527_v59 = vsel %vm3517_vm5, %v3524_v26, %v3526_v18 }
 0x6a7   :  { %v3530_v57 = vsel %vm3518_vm3, %v3512_v17, %v3529_v54  ;;  %v3649_v3 = vadd.s32 536870912, %v3648_v49  ;;  %v5576_v20 = vmul.u32.u64.low %v3532_v29, %v3527_v59  ;;  %v5577_v21 = vmul.u32.u64.high %v3532_v29, %v3527_v59, %v5576_v20 }
 0x6a8   :  { %v3531_v15 = vsel %vm3517_vm5, %v3528_v47, %v3530_v57  ;;  %v3523_v22 = vsel %vm3517_vm5, %v3520_v10, %v3522_v52  ;;  %v3644_v4 = vadd.s32 %v5558_v61, %v5555_v63  ;;  %vm3589_vm11 = vcmp.le.f32.partialorder %v3588_v11, 0.7853982 }
 0x6a9   :  { %v5579_v58 = vmul.u32.u64.low %v3532_v29, %v3531_v15  ;;  %v5580_v28 = vmul.u32.u64.high %v3532_v29, %v3531_v15, %v5579_v58  ;;  %v3650_v56 = vshrl.u32 %v3649_v3, 30  ;;  %v3542_v35 = vadd.s32 1, %v5577_v21 }
 0x6aa   :  { %v3539_v39 = vmul.u32 %v3532_v29, %v3523_v22  ;;  %vm3486_vm12 = vcmp.lt.s32.totalorder %v5518_v43, 0  ;;  %vm3485_vm13 = vcmp.le.f32.partialorder %v3484_v55, 0.7853982  ;;  %v4243_v58 = vld [vmem:[%s5630_s1 + $0x50] sm:$0xff]  ;;  %vm3680_vm3 = vweird.f32 %v5516_v48  ;;  %s4976_s1 = smov [#allocation2]  }
 0x6ab   :  { %v3651_v2 = vshll.u32 %v3650_v56, 30  ;;  %vm3541_vm6 = vc.u32 %v5580_v28, %v5576_v20  ;;  %v3540_v32 = vadd.s32 %v5576_v20, %v5580_v28  ;;  %v3674_v61 = vsub.s32 4, %v3650_v56  ;;  %s4179_s30 = sshll.u32 %s4976_s1, 4  ;;  %s4180_s30 = int_to_ptr.vmem [resolvable:$true] %s4179_s30 }
 0x6ac   :  { %v3543_v34 = vsel %vm3541_vm6, %v3542_v35, %v5577_v21  ;;  %v3702_v35 = vsel %vm31_vm1, %v4243_v58, 0  ;;  %vm3576_vm6 = vweird.f32 %v5518_v43  ;;  %s4942_s4 = scalar_lea.vmem %s4180_s30, 64  ;;  %p4947_p1 = scmp.lt.s32.totalorder %s4180_s30, %s4180_s30 }
 0x6ad   :  { %v3652_v37 = vsub.s32 %v3648_v49, %v3651_v2  ;;  %v3544_v0 = vadd.s32 %v3543_v34, %v3539_v39  ;;  %v3675_v49 = vsel %vm3590_vm10, %v3674_v61, %v3650_v56  ;;  %p4943_p0 = scmp.ne.s32.totalorder %s4180_s30, %s4942_s4  ;;  %p4948_p2 = scmp.lt.s32.totalorder %s4942_s4, %s4942_s4 }
 0x6ae   :  { %v3677_v10 = vsel %vm3589_vm11, 0, %v3675_v49 }
 0x6af   :  { %v3654_v1 = vsub.s32 0, %v3652_v37  ;;  %v3545_v62 = vadd.s32 536870912, %v3544_v0  ;;  %v3681_v15 = vadd.s32 3, %v3677_v10  ;;  %p4949_p3 = por %p4948_p2, %p4947_p1 }
 0x6b1   :  { %v4240_v9 = vmin.u32 %v3654_v1, %v3652_v37  ;;  %v3546_v46 = vshrl.u32 %v3545_v62, 30  ;;  %v3682_v28 = vand.u32 3, %v3681_v15  ;;  %v3774_v1 = vand.u32 4294901760, %v3702_v35  ;;  %p4950_p4 = pnand %p4949_p3, %p4943_p0 }
 0x6b3   :  { %v3656_v40 = vclz %v4240_v9  ;;  %v3547_v45 = vshll.u32 %v3546_v46, 30  ;;  %v3570_v3 = vsub.s32 4, %v3546_v46  ;;  %vm3687_vm14 = vcmp.eq.s32.totalorder %v3682_v28, 2 }
 0x6b4   :  { %vm3684_vm15 = vcmp.eq.s32.totalorder %v3682_v28, 0  ;;  %vm3683_vm2 = vcmp.lt.s32.totalorder %v3682_v28, 2 }
 0x6b5   :  { %v4241_v33 = vadd.s32 4294967294, %v3656_v40  ;;  %v3548_v7 = vsub.s32 %v3544_v0, %v3547_v45  ;;  %v3571_v21 = vsel %vm3486_vm12, %v3570_v3, %v3546_v46 }
 0x6b6   :  { %v3573_v2 = vsel %vm3485_vm13, 0, %v3571_v21 }
 0x6b7   :  { %vm4242_vm7 = vcmp.lt.s32.totalorder %v4241_v33, 0  ;;  %v3550_v42 = vsub.s32 0, %v3548_v7  ;;  %v3577_v55 = vadd.s32 3, %v3573_v2 }
 0x6b8   :  { %v3659_v41 = vsel %vm4242_vm7, 0, %v4241_v33  ;;  %v3775_v33 = vsub.f32 %v3702_v35, %v3774_v1 }
 0x6b9   :  { %v3660_v53 = vsub.s32 32, %v3659_v41  ;;  %v3664_v24 = vsub.s32 4294967266, %v3659_v41  ;;  %v4236_v19 = vmin.u32 %v3550_v42, %v3548_v7  ;;  %v3661_v23 = vshll.u32 %v3652_v37, %v3659_v41 }
 0x6ba   :  { %v3578_v40 = vand.u32 3, %v3577_v55 }
 0x6bb   :  { %v3662_v25 = vshrl.u32 %v3644_v4, %v3660_v53  ;;  %v3665_v60 = vadd.s32 127, %v3664_v24  ;;  %v3552_v12 = vclz %v4236_v19  ;;  %v3776_v19 = vand.u32 4294901760, %v3775_v33 }
 0x6bc   :  { %vm3583_vm1 = vcmp.eq.s32.totalorder %v3578_v40, 2  ;;  %vm3580_vm4 = vcmp.eq.s32.totalorder %v3578_v40, 0  ;;  %vm3579_vm5 = vcmp.lt.s32.totalorder %v3578_v40, 2 }
 0x6bd   :  { %v3663_v30 = vor.u32 %v3662_v25, %v3661_v23  ;;  %v3666_v51 = vshll.u32 %v3665_v60, 23  ;;  %v4237_v27 = vadd.s32 4294967294, %v3552_v12 }
 0x6bf   :  { %v3667_v50 = vor.u32 4788187, %v3666_v51  ;;  %vm4238_vm9 = vcmp.lt.s32.totalorder %v4237_v27, 0  ;;  %v3670_v31 = vcvt.s32.f32 %v3663_v30  ;;  %v3777_v30 = vsub.f32 %v3775_v33, %v3776_v19 }
 0x6c0   :  { %v3555_v6 = vsel %vm4238_vm9, 0, %v4237_v27 }
 0x6c1   :  { %v3668_v29 = vand.u32 2147483647, %v3667_v50  ;;  %v3556_v38 = vsub.s32 32, %v3555_v6  ;;  %v3560_v14 = vsub.s32 4294967266, %v3555_v6  ;;  %v3557_v17 = vshll.u32 %v3548_v7, %v3555_v6 }
 0x6c3   :  { %v3671_v63 = vmul.f32 %v3670_v31, %v3668_v29  ;;  %v3558_v16 = vshrl.u32 %v3540_v32, %v3556_v38  ;;  %v3561_v26 = vadd.s32 127, %v3560_v14  ;;  %v3778_v31 = vand.u32 4294901760, %v3777_v30 }
 0x6c5   :  { %v3672_v44 = vxor.u32 2147483648, %v3671_v63  ;;  %v3559_v36 = vor.u32 %v3558_v16, %v3557_v17  ;;  %v3562_v8 = vshll.u32 %v3561_v26, 23  ;;  %v3699_v17 = vpop.permute.xlu0 %3698 }
 0x6c7   :  { %v3673_v47 = vsel %vm3590_vm10, %v3672_v44, %v3671_v63  ;;  %v3563_v54 = vor.u32 4788187, %v3562_v8  ;;  %v3566_v59 = vcvt.s32.f32 %v3559_v36 }
 0x6c8   :  { %v3676_v18 = vsel %vm3589_vm11, %v5516_v48, %v3673_v47 }
 0x6c9   :  { %4930 = vcosq.f32 %v3676_v18  ;;  %v3564_v52 = vand.u32 2147483647, %v3563_v54 }
 0x6ca   :  { %4932 = vsinq.f32 %v3676_v18 }
 0x6cb   :  { %v3567_v57 = vmul.f32 %v3566_v59, %v3564_v52 }
 0x6cd   :  { %v3568_v20 = vxor.u32 2147483648, %v3567_v57 }
 0x6cf   :  { %v3569_v11 = vsel %vm3486_vm12, %v3568_v20, %v3567_v57 }
 0x6d0   :  { %v3572_v56 = vsel %vm3485_vm13, %v5518_v43, %v3569_v11 }
 0x6d1   :  { %4934 = vcosq.f32 %v3572_v56 }
 0x6d2   :  { %4936 = vsinq.f32 %v3572_v56 }
 0x6d3   :  { %v4931_v22 = vpop.eup %4930 }
 0x6d4   :  { %v4933_v39 = vpop.eup %4932  ;;  %v3688_v37 = vxor.u32 2147483648, %v4931_v22 }
 0x6d5   :  { %v3685_v34 = vxor.u32 2147483648, %v4933_v39 }
 0x6d6   :  { %v3689_v0 = vsel %vm3687_vm14, %v3688_v37, %v4933_v39 }
 0x6d7   :  { %v3686_v62 = vsel %vm3684_vm15, %v4931_v22, %v3685_v34 }
 0x6d8   :  { %v3690_v9 = vsel %vm3683_vm2, %v3686_v62, %v3689_v0 }
 0x6d9   :  { %v3691_v46 = vsel %vm3680_vm3, nan, %v3690_v9 }
 0x6da   :  { %v3705_v45 = vsel %vm38_vm0, %v3691_v46, 0 }
 0x6db   :  { %v3711_v7 = vand.u32 4294901760, %v3705_v45  ;;  %v4935_v41 = vpop.eup %4934 }
 0x6dc   :  { %v4937_v42 = vpop.eup %4936  ;;  %v3584_v4 = vxor.u32 2147483648, %v4935_v41 }
 0x6dd   :  { %v3793_v53 = vsub.f32 %v3705_v45, %v3711_v7  ;;  %v3581_v24 = vxor.u32 2147483648, %v4937_v42 }
 0x6de   :  { %v3585_v23 = vsel %vm3583_vm1, %v3584_v4, %v4937_v42 }
 0x6df   :  { %v3582_v25 = vsel %vm3580_vm4, %v4935_v41, %v3581_v24  ;;  %v3794_v60 = vand.u32 4294901760, %v3793_v53 }
 0x6e0   :  { %v3586_v48 = vsel %vm3579_vm5, %v3582_v25, %v3585_v23 }
 0x6e1   :  { %v3587_v12 = vsel %vm3576_vm6, nan, %v3586_v48  ;;  %v3795_v29 = vsub.f32 %v3793_v53, %v3794_v60 }
 0x6e2   :  { %v3708_v51 = vand.u32 4294901760, %v3587_v12 }
 0x6e3   :  { %v3796_v38 = vand.u32 4294901760, %v3795_v29 }
 0x6e4   :  { %v4757_v27 = vpack.c.bf16 %v3711_v7, %v3708_v51  ;;  %v3786_v50 = vsub.f32 %v3587_v12, %v3708_v51 }
 0x6e6   :  { %4758 = vmatpush3.bf16.msra.mxu1 %v4757_v27  ;;  %v3787_v6 = vand.u32 4294901760, %v3786_v50  ;;  %v4763_v63 = vpack.c.bf16 %v3793_v53, %v3786_v50 }
 0x6e7   :  { %4759 = vmatprep.subr.bf16.mxu1 %v4973_v13 }
 0x6e8   :  { %v3788_v32 = vsub.f32 %v3786_v50, %v3787_v6  ;;  %v4769_v61 = vpack.c.bf16 %v3794_v60, %v3787_v6 }
 0x6e9   :  { %4599 = vmatmul.mubr.f32.vlgmr.msra.gmra.mrb[4].mxu1 %v3778_v31 }
 0x6ea   :  { %v3789_v14 = vand.u32 4294901760, %v3788_v32  ;;  %4605 = vmatprep.mubr.msk.f32.mxu1 %vm4974_vm8, %v4975_v5 }
 0x6ec   :  { %v4760_v43 = vpack.c.bf16 %v3796_v38, %v3789_v14 }
 0x6ee   :  { %4761 = vmatpush3.bf16.msra.mxu1 %v4760_v43 }
 0x6ef   :  { %4762 = vmatprep.subr.bf16.mxu1 %v4973_v13 }
 0x6f1   :  { %4606 = vmatmul.mubr.f32.vlgmr.msra.gmra.mrb[4].mxu1 %v3774_v1 }
 0x6f2   :  { %4764 = vmatpush3.bf16.msra.mxu1 %v4763_v63  ;;  %4612 = vmatprep.mubr.msk.f32.mxu1 %vm4974_vm8, %v4975_v5 }
 0x6f3   :  { %4765 = vmatprep.subr.bf16.mxu1 %v4973_v13 }
 0x6f9   :  { %4613 = vmatmul.mubr.f32.vlgmr.msra.gmra.mrb[4].mxu1 %v3775_v33 }
 0x6fa   :  { %4767 = vmatpush3.bf16.msra.mxu1 %v4757_v27  ;;  %4619 = vmatprep.mubr.msk.f32.mxu1 %vm4974_vm8, %v4975_v5 }
 0x6fb   :  { %4768 = vmatprep.subr.bf16.mxu1 %v4973_v13 }
 0x701   :  { %4620 = vmatmul.mubr.f32.vlgmr.msra.gmra.mrb[4].mxu1 %v3776_v19 }
 0x702   :  { %4770 = vmatpush3.bf16.msra.mxu1 %v4769_v61  ;;  %4626 = vmatprep.mubr.msk.f32.mxu1 %vm4974_vm8, %v4975_v5 }
 0x703   :  { %4771 = vmatprep.subr.bf16.mxu1 %v4973_v13 }
 0x709   :  { %4627 = vmatmul.mubr.f32.vlgmr.msra.gmra.mrb[4].mxu1 %v3774_v1 }
 0x70a   :  { %4773 = vmatpush3.bf16.msra.mxu1 %v4757_v27  ;;  %4633 = vmatprep.mubr.msk.f32.mxu1 %vm4974_vm8, %v4975_v5 }
 0x711   :  { %4634 = vmatmul.mubr.f32.vlgmr.msra.gmra.mrb[4].mxu1 %v3774_v1 }
 0x7e4   :  { %v4162_v16 = vpop.f32.mrb[4].mxu1 }
 0x7e5   :  { %v4784_v26 = vadd.f32 %v4162_v16, %v3699_v17  ;;  %v4635_v44 = vpop.f32.mrb[5].mxu1 }
 0x7e7   :  { %v4245_v36 = vmul.f32 -1.442695, %v4784_v26 }
 0x7e9   :  { %4938 = vpow2.f32 %v4245_v36 }
 0x7f3   :  { %v4939_v8 = vpop.eup %4938 }
 0x7f4   :  { %v4169_v47 = vadd.f32 1.0, %v4939_v8 }
 0x7f6   :  { %4940 = vrcp.f32 %v4169_v47 }
 0x800   :  { %v4941_v49 = vpop.eup %4940 }
 0x801   :  { %4172 = vst [vmem:[#allocation2] sm:$0x7] %v4941_v49 }
 0x802   :  { %4953 = shalt.err (!%p4950_p4)
}
 0x803   :  { %s4954_s7 = scalar_lea.hbm %s5632_s3, 64 }
 0x804   :  { %p4955_p5 = scmp.ne.s32.totalorder %s5632_s3, %s4954_s7  ;;  %p4958_p6 = scmp.lt.u32.totalorder %s4954_s7, %s5632_s3 }
 0x806   :  { %p4960_p7 = pnand %p4958_p6, %p4955_p5 }
 0x808   :  { %4963 = shalt.err (!%p4960_p7)
}
 0x809   :  { %4182 = dma.vmem_to_hbm [thread:$0]  %s4180_s30, 64, %s5632_s3, [#allocation3]  }
 0x80a   :  { %4964 = dma.done.wait [#allocation3], 64  }
 0x80b   :  { %4965 = vsyncadd [#allocation3], 4294967232 }
 0x80c   :  { %4186 = vsyncpa [#allocation3], 1 }

</bundles_post_ra>
